<compile_context>
chip_gen: v6e
topology: v6e:2x2x1
jax: 0.10.0
libtpu: 0.0.40
codegen_flags: <defaults>
</compile_context>

<pallas_src>
import numpy as np
import jax
import jax.numpy as jnp
from jax.experimental import pallas as pl
from jax.experimental.pallas import tpu as pltpu


def _make_kernel(Nb, Hp, Wp, Cin, Cout, ksize):
    pad = ksize // 2

    def kernel(x_ref, w_ref, b_ref, o_ref, xb_ref):
        # --- 2x2 average pool on the VPU -------------------------------------
        # x_ref: (Nb, 4, Hp, Wp, Cin); axis 1 enumerates the 2x2 pool window,
        # so pooling is a leading-axis sum of four tiles.
        xs = x_ref[...].astype(jnp.float32)
        pooled = 0.25 * (xs[:, 0] + xs[:, 1] + xs[:, 2] + xs[:, 3])  # (Nb,Hp,Wp,Cin)

        # --- zero-padded pooled image in VMEM scratch (bf16 MXU operand) -----
        if pad:
            xb_ref[...] = jnp.zeros_like(xb_ref)
        xb_ref[:, pad:pad + Hp, pad:pad + Wp, :] = pooled.astype(xb_ref.dtype)
        xb = xb_ref[...]                              # (Nb, Hp+2p, Wp+2p, Cin)

        # --- k*k conv as ONE matmul: gather shifted windows, contract K=k*k*Cin
        taps = [xb[:, dy:dy + Hp, dx:dx + Wp, :]
                for dy in range(ksize) for dx in range(ksize)]
        g = jnp.concatenate(taps, axis=-1)            # (Nb, Hp, Wp, k*k*Cin)
        g = g.reshape(Nb * Hp * Wp, ksize * ksize * Cin)
        acc = jnp.dot(g, w_ref[...], preferred_element_type=jnp.float32)
        # Interior rows only; bias broadcast (1, Cout) -> (Nb*Hp*Wp, Cout).
        # (Cout here is small, so the store is masked; with Cout >= 128 it is a
        #  dense unmasked vst.)
        o_ref[...] = (acc + b_ref[...]).astype(o_ref.dtype)

    return kernel


def down_conv(x, weight, bias, kernel_size=3, images_per_step=8):
    """x: (N, Cin, H, W) NCHW.  weight: (Cout, Cin, k, k).  bias: (Cout,)."""
    N, Cin, H, W = x.shape
    Cout = weight.shape[0]
    assert kernel_size in (1, 3)
    assert H % 2 == 0 and W % 2 == 0
    Hp, Wp = H // 2, W // 2
    pad = kernel_size // 2
    nk = kernel_size * kernel_size

    # Batch Nb images per grid step (largest divisor of N <= images_per_step).
    Nb = 1
    for d in range(1, min(N, images_per_step) + 1):
        if N % d == 0:
            Nb = d

    # Input repack (single XLA copy): NCHW -> (N, 4, Hp, Wp, Cin) bf16, where
    # axis 1 enumerates the 2x2 pool window (q = 2*row + col).
    xg = x.reshape(N, Cin, Hp, 2, Wp, 2).transpose(0, 3, 5, 2, 4, 1)
    xg = xg.reshape(N, 4, Hp, Wp, Cin).astype(jnp.bfloat16)

    # Conv taps as one (k*k*Cin, Cout) bf16 matrix; row index = (dy*k + dx)*Cin + c.
    w_mat = jnp.transpose(weight, (2, 3, 1, 0)).reshape(nk * Cin, Cout)
    w_mat = w_mat.astype(jnp.bfloat16)
    b2 = bias.reshape(1, Cout).astype(jnp.float32)

    kernel = _make_kernel(Nb, Hp, Wp, Cin, Cout, kernel_size)
    out = pl.pallas_call(
        kernel,
        out_shape=jax.ShapeDtypeStruct((N * Hp * Wp, Cout), jnp.float32),
        grid_spec=pltpu.PrefetchScalarGridSpec(
            num_scalar_prefetch=0,
            grid=(N // Nb,),
            in_specs=[
                pl.BlockSpec((Nb, 4, Hp, Wp, Cin), lambda n: (n, 0, 0, 0, 0)),
                # Weights/bias are grid-invariant and tiny here; for large
                # Cin/Cout mark them pipeline_mode=pl.Buffered(1) (or one-shot
                # manual DMA) so they are not double-buffered in VMEM.
                pl.BlockSpec((nk * Cin, Cout), lambda n: (0, 0)),
                pl.BlockSpec((1, Cout), lambda n: (0, 0)),
            ],
            out_specs=pl.BlockSpec((Nb * Hp * Wp, Cout), lambda n: (n, 0)),
            scratch_shapes=[
                pltpu.VMEM((Nb, Hp + 2 * pad, Wp + 2 * pad, Cin), jnp.bfloat16)],
        ),
        compiler_params=pltpu.CompilerParams(dimension_semantics=("parallel",)),
    )(xg, w_mat, b2)

    # (N*Hp*Wp, Cout) -> NCHW (N, Cout, Hp, Wp): one output transpose.
    return jnp.transpose(out.reshape(N, Hp, Wp, Cout), (0, 3, 1, 2))


if __name__ == "__main__":
    key = jax.random.PRNGKey(0)
    kx, kw, kb = jax.random.split(key, 3)
    N, Cin, Cout, H, W, K = 2, 4, 8, 16, 16, 3

    x = jax.random.normal(kx, (N, Cin, H, W), jnp.float32)
    # Deterministic, PyTorch-Conv2d-style uniform init.
    fan_in = Cin * K * K
    bound = 1.0 / np.sqrt(fan_in)
    weight = jax.random.uniform(kw, (Cout, Cin, K, K), jnp.float32, -bound, bound)
    bias = jax.random.uniform(kb, (Cout,), jnp.float32, -bound, bound)

    y = jax.block_until_ready(down_conv(x, weight, bias, kernel_size=K))

    # Plain-JAX reference of the PyTorch forward: AvgPool2d(2) -> Conv2d(3, padding=1).
    xp = jax.lax.reduce_window(x, 0.0, jax.lax.add,
                               (1, 1, 2, 2), (1, 1, 2, 2), 'VALID') / 4.0
    y_ref = jax.lax.conv_general_dilated(
        xp, weight, window_strides=(1, 1), padding='SAME',
        dimension_numbers=('NCHW', 'OIHW', 'NCHW')) + bias[None, :, None, None]

    assert y.shape == (N, Cout, H // 2, W // 2)
    assert float(jnp.max(jnp.abs(y - y_ref))) < 2e-2
    print("KERNEL_OK")
</pallas_src>

<mosaic_0001>
module attributes {stable_mosaic.version = 11 : i64} {
  func.func @kernel(%arg0: i32, %arg1: memref<2x4x8x8x4xbf16, #tpu.memory_space<vmem>>, %arg2: memref<36x8xbf16, #tpu.memory_space<vmem>>, %arg3: memref<1x8xf32, #tpu.memory_space<vmem>>, %arg4: memref<128x8xf32, #tpu.memory_space<vmem>>, %arg5: memref<2x10x10x4xbf16, #tpu.memory_space<vmem>>) attributes {dimension_semantics = [#tpu.dimension_semantics<parallel>], iteration_bounds = array<i64: 1>, scalar_prefetch = 0 : i64, scratch_operands = 1 : i64, tpu.core_type = #tpu.core_type<tc>, window_params = [{transform_indices = @transform_0, window_bounds = array<i64: 2, 4, 8, 8, 4>}, {pipeline_mode = #tpu.pipeline_mode<synchronous>, transform_indices = @transform_1, window_bounds = array<i64: 36, 8>}, {pipeline_mode = #tpu.pipeline_mode<synchronous>, transform_indices = @transform_2, window_bounds = array<i64: 1, 8>}, {transform_indices = @transform_3, window_bounds = array<i64: 128, 8>}]} {
    %c0 = arith.constant 0 : index
    %c0_0 = arith.constant 0 : index
    %c0_1 = arith.constant 0 : index
    %c0_2 = arith.constant 0 : index
    %c0_3 = arith.constant 0 : index
    %0 = vector.load %arg1[%c0, %c0_0, %c0_1, %c0_2, %c0_3] : memref<2x4x8x8x4xbf16, #tpu.memory_space<vmem>>, vector<2x4x8x8x4xbf16>
    %1 = arith.extf %0 : vector<2x4x8x8x4xbf16> to vector<2x4x8x8x4xf32>
    %2 = vector.extract_strided_slice %1 {offsets = [0, 0, 0, 0, 0], sizes = [2, 1, 8, 8, 4], strides = [1, 1, 1, 1, 1]} : vector<2x4x8x8x4xf32> to vector<2x1x8x8x4xf32>
    %3 = vector.shape_cast %2 : vector<2x1x8x8x4xf32> to vector<2x8x8x4xf32>
    %4 = vector.extract_strided_slice %1 {offsets = [0, 1, 0, 0, 0], sizes = [2, 1, 8, 8, 4], strides = [1, 1, 1, 1, 1]} : vector<2x4x8x8x4xf32> to vector<2x1x8x8x4xf32>
    %5 = vector.shape_cast %4 : vector<2x1x8x8x4xf32> to vector<2x8x8x4xf32>
    %6 = arith.addf %3, %5 : vector<2x8x8x4xf32>
    %7 = vector.extract_strided_slice %1 {offsets = [0, 2, 0, 0, 0], sizes = [2, 1, 8, 8, 4], strides = [1, 1, 1, 1, 1]} : vector<2x4x8x8x4xf32> to vector<2x1x8x8x4xf32>
    %8 = vector.shape_cast %7 : vector<2x1x8x8x4xf32> to vector<2x8x8x4xf32>
    %9 = arith.addf %6, %8 : vector<2x8x8x4xf32>
    %10 = vector.extract_strided_slice %1 {offsets = [0, 3, 0, 0, 0], sizes = [2, 1, 8, 8, 4], strides = [1, 1, 1, 1, 1]} : vector<2x4x8x8x4xf32> to vector<2x1x8x8x4xf32>
    %11 = vector.shape_cast %10 : vector<2x1x8x8x4xf32> to vector<2x8x8x4xf32>
    %12 = arith.addf %9, %11 : vector<2x8x8x4xf32>
    %cst = arith.constant 2.500000e-01 : f32
    %13 = vector.broadcast %cst : f32 to vector<2x8x8x4xf32>
    %14 = arith.mulf %13, %12 : vector<2x8x8x4xf32>
    %cst_4 = arith.constant 0.000000e+00 : bf16
    %15 = vector.broadcast %cst_4 : bf16 to vector<2x10x10x4xbf16>
    %c0_5 = arith.constant 0 : index
    %c0_6 = arith.constant 0 : index
    %c0_7 = arith.constant 0 : index
    %c0_8 = arith.constant 0 : index
    %16 = vector.load %arg5[%c0_5, %c0_6, %c0_7, %c0_8] : memref<2x10x10x4xbf16, #tpu.memory_space<vmem>>, vector<2x10x10x4xbf16>
    tpu.vector_store %arg5[%c0_5, %c0_6, %c0_7, %c0_8], %15 {strides = array<i32>} : memref<2x10x10x4xbf16, #tpu.memory_space<vmem>>, vector<2x10x10x4xbf16>,
    %17 = arith.truncf %14 : vector<2x8x8x4xf32> to vector<2x8x8x4xbf16>
    %c0_9 = arith.constant 0 : index
    %c1 = arith.constant 1 : index
    %c1_10 = arith.constant 1 : index
    %c0_11 = arith.constant 0 : index
    %18 = vector.load %arg5[%c0_9, %c1, %c1_10, %c0_11] : memref<2x10x10x4xbf16, #tpu.memory_space<vmem>>, vector<2x8x8x4xbf16>
    tpu.vector_store %arg5[%c0_9, %c1, %c1_10, %c0_11], %17 {strides = array<i32>} : memref<2x10x10x4xbf16, #tpu.memory_space<vmem>>, vector<2x8x8x4xbf16>,
    %c0_12 = arith.constant 0 : index
    %c0_13 = arith.constant 0 : index
    %c0_14 = arith.constant 0 : index
    %c0_15 = arith.constant 0 : index
    %19 = vector.load %arg5[%c0_12, %c0_13, %c0_14, %c0_15] : memref<2x10x10x4xbf16, #tpu.memory_space<vmem>>, vector<2x10x10x4xbf16>
    %20 = vector.extract_strided_slice %19 {offsets = [0, 0, 0, 0], sizes = [2, 8, 8, 4], strides = [1, 1, 1, 1]} : vector<2x10x10x4xbf16> to vector<2x8x8x4xbf16>
    %21 = vector.extract_strided_slice %19 {offsets = [0, 0, 1, 0], sizes = [2, 8, 8, 4], strides = [1, 1, 1, 1]} : vector<2x10x10x4xbf16> to vector<2x8x8x4xbf16>
    %22 = vector.extract_strided_slice %19 {offsets = [0, 0, 2, 0], sizes = [2, 8, 8, 4], strides = [1, 1, 1, 1]} : vector<2x10x10x4xbf16> to vector<2x8x8x4xbf16>
    %23 = vector.extract_strided_slice %19 {offsets = [0, 1, 0, 0], sizes = [2, 8, 8, 4], strides = [1, 1, 1, 1]} : vector<2x10x10x4xbf16> to vector<2x8x8x4xbf16>
    %24 = vector.extract_strided_slice %19 {offsets = [0, 1, 1, 0], sizes = [2, 8, 8, 4], strides = [1, 1, 1, 1]} : vector<2x10x10x4xbf16> to vector<2x8x8x4xbf16>
    %25 = vector.extract_strided_slice %19 {offsets = [0, 1, 2, 0], sizes = [2, 8, 8, 4], strides = [1, 1, 1, 1]} : vector<2x10x10x4xbf16> to vector<2x8x8x4xbf16>
    %26 = vector.extract_strided_slice %19 {offsets = [0, 2, 0, 0], sizes = [2, 8, 8, 4], strides = [1, 1, 1, 1]} : vector<2x10x10x4xbf16> to vector<2x8x8x4xbf16>
    %27 = vector.extract_strided_slice %19 {offsets = [0, 2, 1, 0], sizes = [2, 8, 8, 4], strides = [1, 1, 1, 1]} : vector<2x10x10x4xbf16> to vector<2x8x8x4xbf16>
    %28 = vector.extract_strided_slice %19 {offsets = [0, 2, 2, 0], sizes = [2, 8, 8, 4], strides = [1, 1, 1, 1]} : vector<2x10x10x4xbf16> to vector<2x8x8x4xbf16>
    %29 = tpu.concatenate %20, %21, %22, %23, %24, %25, %26, %27, %28 in 3 : vector<2x8x8x4xbf16>, vector<2x8x8x4xbf16>, vector<2x8x8x4xbf16>, vector<2x8x8x4xbf16>, vector<2x8x8x4xbf16>, vector<2x8x8x4xbf16>, vector<2x8x8x4xbf16>, vector<2x8x8x4xbf16>, vector<2x8x8x4xbf16> -> vector<2x8x8x36xbf16>
    %30 = vector.shape_cast %29 : vector<2x8x8x36xbf16> to vector<128x36xbf16>
    %c0_16 = arith.constant 0 : index
    %c0_17 = arith.constant 0 : index
    %31 = vector.load %arg2[%c0_16, %c0_17] : memref<36x8xbf16, #tpu.memory_space<vmem>>, vector<36x8xbf16>
    %cst_18 = arith.constant dense<0.000000e+00> : vector<128x8xf32>
    %32 = tpu.matmul %30, %31, %cst_18 {dimension_numbers = #tpu.dot_dimension_numbers<[1], [0], [0], [1], [0, 0, 1, 1], [], []>} : vector<128x36xbf16>, vector<36x8xbf16>, vector<128x8xf32> -> vector<128x8xf32>
    %c0_19 = arith.constant 0 : index
    %c0_20 = arith.constant 0 : index
    %33 = vector.load %arg3[%c0_19, %c0_20] : memref<1x8xf32, #tpu.memory_space<vmem>>, vector<1x8xf32>
    %34 = vector.broadcast %33 : vector<1x8xf32> to vector<128x8xf32>
    %35 = arith.addf %32, %34 : vector<128x8xf32>
    %c0_21 = arith.constant 0 : index
    %c0_22 = arith.constant 0 : index
    %36 = vector.load %arg4[%c0_21, %c0_22] : memref<128x8xf32, #tpu.memory_space<vmem>>, vector<128x8xf32>
    tpu.vector_store %arg4[%c0_21, %c0_22], %35 {strides = array<i32>} : memref<128x8xf32, #tpu.memory_space<vmem>>, vector<128x8xf32>,
    return
  }
  func.func @transform_0(%arg0: i32) -> (i32, i32, i32, i32, i32) {
    %c0_i32 = arith.constant 0 : i32
    %c0_i32_0 = arith.constant 0 : i32
    %c0_i32_1 = arith.constant 0 : i32
    %c0_i32_2 = arith.constant 0 : i32
    %c0_i32_3 = arith.constant 0 : i32
    return %arg0, %c0_i32, %c0_i32_0, %c0_i32_1, %c0_i32_2 : i32, i32, i32, i32, i32
  }
  func.func @transform_1(%arg0: i32) -> (i32, i32) {
    %c0_i32 = arith.constant 0 : i32
    %c0_i32_0 = arith.constant 0 : i32
    %c0_i32_1 = arith.constant 0 : i32
    return %c0_i32, %c0_i32_0 : i32, i32
  }
  func.func @transform_2(%arg0: i32) -> (i32, i32) {
    %c0_i32 = arith.constant 0 : i32
    %c0_i32_0 = arith.constant 0 : i32
    %c0_i32_1 = arith.constant 0 : i32
    return %c0_i32, %c0_i32_0 : i32, i32
  }
  func.func @transform_3(%arg0: i32) -> (i32, i32) {
    %c0_i32 = arith.constant 0 : i32
    %c0_i32_0 = arith.constant 0 : i32
    return %arg0, %c0_i32 : i32, i32
  }
}

</mosaic_0001>

<bundles_post_ra>
// kernel: tpu_custom_call.1
= control target key start
LH: loop header
LB: loop body
LE: loop exit
PB: predicated region body
PF: predicated region fallthrough
CT: control target
= control target key end

     0   :  { %vm207_vm0 = vcmask 27648   ;;  %vm209_vm1 = vcmask 24576   ;;  %v1988_v0 = vmov 0   ;;  %vm475_vm2 = vsmask.f32 7938  ;;  %s1989_s9 = smov 8   ;;  %s3154_s0 = inlined_call_operand.vmem [shape: bf16[2,4,8,8,4], index: 0, kind: input, shape index: {}]   ;;  %s3155_s1 = inlined_call_operand.vmem [shape: bf16[36,8], index: 1, kind: input, shape index: {}]   ;;  %s3156_s2 = inlined_call_operand.vmem [shape: f32[1,8], index: 2, kind: input, shape index: {}]   ;;  %s3157_s3 = inlined_call_operand.vmem [shape: f32[128,8], index: 3, kind: output, shape index: {}]  }
   0x1   :  { %208 = vst.msk [vmem:[#allocation2] sm:$0xf] %vm207_vm0, %v1988_v0  ;;  %211 = vst.msk [vmem:[#allocation2 + $0x8] sm:$0xf] %vm207_vm0, %v1988_v0  ;;  %v1734_v1 = vld [vmem:[%s3154_s0] sm:$0xff]   ;;  %v2084_v21 = vld [vmem:[%s3154_s0 + $0x8] sm:$0xff]  }
   0x2   :  { %210 = vst.msk [vmem:[#allocation2 + $0x4] sm:$0x1] %vm209_vm1, %v1988_v0  ;;  %212 = vst.msk [vmem:[#allocation2 + $0xc] sm:$0x1] %vm209_vm1, %v1988_v0  ;;  %v1864_v2 = vld [vmem:[%s3154_s0 + $0x20] sm:$0xff]   ;;  %v1736_v4 = vunpack.c.h.bf16 %v1734_v1  ;;  %v1735_v8 = vunpack.c.l.bf16 %v1734_v1  ;;  %v2089_v26 = vld [vmem:[%s3154_s0 + $0x28] sm:$0xff]   ;;  %v1739_v35 = vunpack.c.l.bf16 %v2084_v21 }
   0x3   :  { %213 = vst.msk [vmem:[#allocation2 + $0x10] sm:$0xf] %vm207_vm0, %v1988_v0  ;;  %215 = vst.msk [vmem:[#allocation2 + $0x18] sm:$0xf] %vm207_vm0, %v1988_v0  ;;  %v1868_v3 = vld [vmem:[%s3154_s0 + $0x40] sm:$0xff]   ;;  %v1752_v5 = vunpack.c.h.bf16 %v1864_v2  ;;  %v1751_v11 = vunpack.c.l.bf16 %v1864_v2  ;;  %v2094_v27 = vld [vmem:[%s3154_s0 + $0x48] sm:$0xff]   ;;  %v1755_v41 = vunpack.c.l.bf16 %v2089_v26 }
   0x4   :  { %214 = vst.msk [vmem:[#allocation2 + $0x14] sm:$0x1] %vm209_vm1, %v1988_v0  ;;  %216 = vst.msk [vmem:[#allocation2 + $0x1c] sm:$0x1] %vm209_vm1, %v1988_v0  ;;  %v1768_v6 = vunpack.c.h.bf16 %v1868_v3  ;;  %v1872_v7 = vld [vmem:[%s3154_s0 + $0x60] sm:$0xff]   ;;  %v1767_v12 = vunpack.c.l.bf16 %v1868_v3  ;;  %v2099_v32 = vld [vmem:[%s3154_s0 + $0x68] sm:$0xff]   ;;  %v1771_v42 = vunpack.c.l.bf16 %v2094_v27 }
   0x5   :  { %217 = vst.msk [vmem:[#allocation2 + $0x20] sm:$0xf] %vm207_vm0, %v1988_v0  ;;  %219 = vst.msk [vmem:[#allocation2 + $0x28] sm:$0xf] %vm207_vm0, %v1988_v0  ;;  %v1876_v9 = vld [vmem:[%s3154_s0 + $0x80] sm:$0xff]   ;;  %v1784_v10 = vunpack.c.h.bf16 %v1872_v7  ;;  %v1783_v13 = vunpack.c.l.bf16 %v1872_v7  ;;  %v144_v17 = vadd.f32 %v1752_v5, %v1736_v4  ;;  %v143_v22 = vadd.f32 %v1751_v11, %v1735_v8  ;;  %v2109_v4 = vld [vmem:[%s3154_s0 + $0x88] sm:$0xff]  }
   0x6   :  { %218 = vst.msk [vmem:[#allocation2 + $0x24] sm:$0x1] %vm209_vm1, %v1988_v0  ;;  %220 = vst.msk [vmem:[#allocation2 + $0x2c] sm:$0x1] %vm209_vm1, %v1988_v0  ;;  %v1880_v14 = vld [vmem:[%s3154_s0 + $0xa0] sm:$0xff]   ;;  %v1800_v18 = vunpack.c.h.bf16 %v1876_v9  ;;  %v1799_v24 = vunpack.c.l.bf16 %v1876_v9  ;;  %v1787_v47 = vunpack.c.l.bf16 %v2099_v32  ;;  %v145_v51 = vadd.f32 %v1755_v41, %v1739_v35  ;;  %s1990_s14 = smov 4  }
   0x7   :  { %221 = vst.msk [vmem:[#allocation2 + $0x30] sm:$0xf] %vm207_vm0, %v1988_v0  ;;  %223 = vst.msk [vmem:[#allocation2 + $0x38] sm:$0xf] %vm207_vm0, %v1988_v0  ;;  %v1884_v15 = vld [vmem:[%s3154_s0 + $0xc0] sm:$0xff]   ;;  %v1816_v19 = vunpack.c.h.bf16 %v1880_v14  ;;  %v1815_v25 = vunpack.c.l.bf16 %v1880_v14  ;;  %v160_v28 = vadd.f32 %v1768_v6, %v144_v17  ;;  %v159_v33 = vadd.f32 %v1767_v12, %v143_v22  ;;  %s1991_s19 = smov 12  }
   0x8   :  { %222 = vst.msk [vmem:[#allocation2 + $0x34] sm:$0x1] %vm209_vm1, %v1988_v0  ;;  %224 = vst.msk [vmem:[#allocation2 + $0x3c] sm:$0x1] %vm209_vm1, %v1988_v0  ;;  %v1888_v16 = vld [vmem:[%s3154_s0 + $0xe0] sm:$0xff]   ;;  %v1832_v20 = vunpack.c.h.bf16 %v1884_v15  ;;  %v1831_v30 = vunpack.c.l.bf16 %v1884_v15  ;;  %v161_v3 = vadd.f32 %v1771_v42, %v145_v51  ;;  %v2120_v15 = vld [vmem:[%s3154_s0 + $0xa8] sm:$0xff]   ;;  %v1803_v22 = vunpack.c.l.bf16 %v2109_v4 }
   0x9   :  { %225 = vst.msk [vmem:[#allocation2 + $0x40] sm:$0xf] %vm207_vm0, %v1988_v0  ;;  %227 = vst.msk [vmem:[#allocation2 + $0x48] sm:$0xf] %vm207_vm0, %v1988_v0  ;;  %v1848_v23 = vunpack.c.h.bf16 %v1888_v16  ;;  %v152_v29 = vadd.f32 %v1816_v19, %v1800_v18  ;;  %v1847_v31 = vunpack.c.l.bf16 %v1888_v16  ;;  %v151_v34 = vadd.f32 %v1815_v25, %v1799_v24  ;;  %v576_v36 = vld [vmem:[#allocation2] sm:$0xf] }
   0xa   :  { %226 = vst.msk [vmem:[#allocation2 + $0x44] sm:$0x1] %vm209_vm1, %v1988_v0  ;;  %228 = vst.msk [vmem:[#allocation2 + $0x4c] sm:$0x1] %vm209_vm1, %v1988_v0  ;;  %vm481_vm3 = vsmask.f32 256  ;;  %v176_v39 = vadd.f32 %v1784_v10, %v160_v28  ;;  %v175_v45 = vadd.f32 %v1783_v13, %v159_v33  ;;  %v177_v14 = vadd.f32 %v1787_v47, %v161_v3 }
   0xb   :  { %229 = vst.msk [vmem:[#allocation2 + $0x50] sm:$0xf] %vm207_vm0, %v1988_v0  ;;  %231 = vst.msk [vmem:[#allocation2 + $0x58] sm:$0xf] %vm207_vm0, %v1988_v0  ;;  %v577_v37 = vld [vmem:[#allocation2 + $0x4] sm:$0x1]  ;;  %v168_v40 = vadd.f32 %v1832_v20, %v152_v29  ;;  %v167_v46 = vadd.f32 %v1831_v30, %v151_v34  ;;  %v1819_v35 = vunpack.c.l.bf16 %v2120_v15 }
   0xc   :  { %230 = vst.msk [vmem:[#allocation2 + $0x54] sm:$0x1] %vm209_vm1, %v1988_v0  ;;  %232 = vst.msk [vmem:[#allocation2 + $0x5c] sm:$0x1] %vm209_vm1, %v1988_v0  ;;  %v1659_v43 = vcombine.low %v576_v36, %v577_v37  ;;  %v192_v49 = vmul.f32 0.25, %v176_v39  ;;  %v191_v55 = vmul.f32 0.25, %v175_v45 }
   0xd   :  { %233 = vst.msk [vmem:[#allocation2 + $0x60] sm:$0xf] %vm207_vm0, %v1988_v0  ;;  %235 = vst.msk [vmem:[#allocation2 + $0x68] sm:$0xf] %vm207_vm0, %v1988_v0  ;;  %v184_v50 = vadd.f32 %v1848_v23, %v168_v40  ;;  %v183_v63 = vadd.f32 %v1847_v31, %v167_v46  ;;  %v486_v12 = vld [vmem:[#allocation2 + $0x10] sm:$0xf] }
   0xe   :  { %234 = vst.msk [vmem:[#allocation2 + $0x64] sm:$0x1] %vm209_vm1, %v1988_v0  ;;  %236 = vst.msk [vmem:[#allocation2 + $0x6c] sm:$0x1] %vm209_vm1, %v1988_v0  ;;  %v840_v52 = vrot.slane %v1659_v43, 1  ;;  %v697_v53 = vshrl.u32 %v1659_v43, 16  ;;  %v1718_v59 = vpack.c.bf16 %v192_v49, %v192_v49  ;;  %v1717_v61 = vpack.c.bf16 %v191_v55, %v191_v55 }
   0xf   :  { %237 = vst.msk [vmem:[#allocation2 + $0x70] sm:$0xf] %vm207_vm0, %v1988_v0  ;;  %239 = vst.msk [vmem:[#allocation2 + $0x78] sm:$0xf] %vm207_vm0, %v1988_v0  ;;  %v699_v54 = vshll.u32 %v1659_v43, 16  ;;  %v200_v62 = vmul.f32 0.25, %v184_v50 }
  0x10   :  { %238 = vst.msk [vmem:[#allocation2 + $0x74] sm:$0x1] %vm209_vm1, %v1988_v0  ;;  %240 = vst.msk [vmem:[#allocation2 + $0x7c] sm:$0x1] %vm209_vm1, %v1988_v0  ;;  %856 = vrot.lane.b32.xlu0 %v840_v52, %s1989_s9  ;;  %v322_v1 = vshrl.u32 %v1718_v59, 16  ;;  %v325_v2 = vshll.u32 %v1718_v59, 16 }
  0x11   :  { %241 = vst.msk [vmem:[#allocation2 + $0x80] sm:$0xf] %vm207_vm0, %v1988_v0  ;;  %243 = vst.msk [vmem:[#allocation2 + $0x88] sm:$0xf] %vm207_vm0, %v1988_v0  ;;  %v701_v60 = vrot.slane %v699_v54, 1  ;;  %v314_v6 = vshrl.u32 %v1717_v61, 16  ;;  %v1726_v8 = vpack.c.bf16 %v200_v62, %v200_v62 }
  0x12   :  { %242 = vst.msk [vmem:[#allocation2 + $0x84] sm:$0x1] %vm209_vm1, %v1988_v0  ;;  %244 = vst.msk [vmem:[#allocation2 + $0x8c] sm:$0x1] %vm209_vm1, %v1988_v0  ;;  %v596_v38 = vld [vmem:[#allocation2 + $0x50] sm:$0xf] }
  0x13   :  { %245 = vst.msk [vmem:[#allocation2 + $0x90] sm:$0xf] %vm207_vm0, %v1988_v0  ;;  %247 = vst.msk [vmem:[#allocation2 + $0x98] sm:$0xf] %vm207_vm0, %v1988_v0  ;;  %v597_v44 = vld [vmem:[#allocation2 + $0x54] sm:$0x1]  ;;  %v702_v5 = vor.u32 %v701_v60, %v697_v53 }
  0x14   :  { %246 = vst.msk [vmem:[#allocation2 + $0x94] sm:$0x1] %vm209_vm1, %v1988_v0  ;;  %248 = vst.msk [vmem:[#allocation2 + $0x9c] sm:$0x1] %vm209_vm1, %v1988_v0  ;;  %v1667_v48 = vcombine.low %v596_v38, %v597_v44  ;;  %v317_v7 = vshll.u32 %v1717_v61, 16  ;;  %v324_v10 = vrot.slane %v322_v1, 7 }
  0x15   :  { %vm2113_vm4 = vmand %vm207_vm0, %vm475_vm2  ;;  %v199_v13 = vmul.f32 0.25, %v183_v63  ;;  %v316_v16 = vrot.slane %v314_v6, 7  ;;  %v386_v17 = vshrl.u32 %v1726_v8, 16  ;;  %v389_v18 = vshll.u32 %v1726_v8, 16  ;;  %v489_v20 = vld [vmem:[#allocation2 + $0x14] sm:$0x1] }
  0x16   :  { %v848_v56 = vrot.slane %v1667_v48, 1  ;;  %v753_v57 = vshrl.u32 %v1667_v48, 16  ;;  %v755_v58 = vshll.u32 %v1667_v48, 16  ;;  %vm2125_vm5 = vmand %vm209_vm1, %vm481_vm3  ;;  %v327_v23 = vor.u32 %v325_v2, %v324_v10  ;;  %v477_v24 = vld [vmem:[#allocation2 + $0x8] sm:$0xf]  ;;  %s1992_s28 = smov 16  }
  0x17   :  { %v1725_v25 = vpack.c.bf16 %v199_v13, %v199_v13  ;;  %v328_v28 = vrot.slane %v324_v10, 4  ;;  %v483_v29 = vld [vmem:[#allocation2 + $0xc] sm:$0x1]  ;;  %v193_v30 = vmul.f32 0.25, %v177_v14  ;;  %v319_v31 = vor.u32 %v317_v7, %v316_v16  ;;  %v534_v39 = vld [vmem:[#allocation2 + $0x60] sm:$0xf] }
  0x18   :  { %v757_v0 = vrot.slane %v755_v58, 1  ;;  %872 = vrot.lane.b32.xlu0 %v848_v56, %s1989_s9  ;;  %v388_v33 = vrot.slane %v386_v17, 7  ;;  %v320_v34 = vrot.slane %v316_v16, 4  ;;  %v2135_v36 = vld [vmem:[%s3154_s0 + $0xc8] sm:$0xff]   ;;  %v487_v38 = vsel %vm2113_vm4, %v327_v23, %v486_v12  ;;  %v537_v43 = vld [vmem:[#allocation2 + $0x64] sm:$0x1] }
  0x19   :  { %v2140_v37 = vld [vmem:[%s3154_s0 + $0xe8] sm:$0xff]   ;;  %v378_v40 = vshrl.u32 %v1725_v25, 16  ;;  %v381_v41 = vshll.u32 %v1725_v25, 16  ;;  %v490_v42 = vsel %vm2125_vm5, %v328_v28, %v489_v20  ;;  %488 = vst [vmem:[#allocation2 + $0x10] sm:$0xf] %v487_v38  ;;  %v478_v44 = vsel %vm2113_vm4, %v319_v31, %v477_v24  ;;  %s1994_s29 = smov 24  }
  0x1a   :  { %v758_v9 = vor.u32 %v757_v0, %v753_v57  ;;  %v391_v45 = vor.u32 %v389_v18, %v388_v33  ;;  %491 = vst [vmem:[#allocation2 + $0x14] sm:$0x1] %v490_v42  ;;  %v484_v46 = vsel %vm2125_vm5, %v320_v34, %v483_v29  ;;  %v392_v47 = vrot.slane %v388_v33, 4  ;;  %479 = vst [vmem:[#allocation2 + $0x8] sm:$0xf] %v478_v44  ;;  %s1995_s30 = smov 28  }
  0x1b   :  { %v380_v48 = vrot.slane %v378_v40, 7  ;;  %485 = vst [vmem:[#allocation2 + $0xc] sm:$0x1] %v484_v46  ;;  %v1719_v49 = vpack.c.bf16 %v193_v30, %v193_v30  ;;  %v1835_v50 = vunpack.c.l.bf16 %v2135_v36  ;;  %v1851_v51 = vunpack.c.l.bf16 %v2140_v37  ;;  %v528_v53 = vld [vmem:[#allocation2 + $0x58] sm:$0xf]  ;;  %s1996_s4 = smov 32  }
  0x1c   :  { %824 = vrot.lane.b32.xlu1 %v758_v9, %s1990_s14  ;;  %808 = vrot.lane.b32.xlu0 %v702_v5, %s1990_s14  ;;  %v535_v52 = vsel %vm2113_vm4, %v391_v45, %v534_v39  ;;  %v538_v54 = vsel %vm2125_vm5, %v392_v47, %v537_v43  ;;  %v531_v55 = vld [vmem:[#allocation2 + $0x5c] sm:$0x1]  ;;  %v153_v56 = vadd.f32 %v1819_v35, %v1803_v22  ;;  %v1740_v57 = vunpack.c.h.bf16 %v2084_v21  ;;  %v492_v21 = vld [vmem:[#allocation2 + $0x18] sm:$0xf] }
  0x1d   :  { %536 = vst [vmem:[#allocation2 + $0x60] sm:$0xf] %v535_v52  ;;  %v383_v58 = vor.u32 %v381_v41, %v380_v48  ;;  %539 = vst [vmem:[#allocation2 + $0x64] sm:$0x1] %v538_v54  ;;  %v384_v59 = vrot.slane %v380_v48, 4  ;;  %v330_v60 = vshrl.u32 %v1719_v49, 16  ;;  %v1756_v63 = vunpack.c.h.bf16 %v2089_v26 }
  0x1e   :  { %v333_v61 = vshll.u32 %v1719_v49, 16  ;;  %v169_v62 = vadd.f32 %v1835_v50, %v153_v56  ;;  %v1772_v0 = vunpack.c.h.bf16 %v2094_v27  ;;  %v495_v5 = vld [vmem:[#allocation2 + $0x1c] sm:$0x1]  ;;  %v1788_v26 = vunpack.c.h.bf16 %v2099_v32  ;;  %v540_v49 = vld [vmem:[#allocation2 + $0x68] sm:$0xf] }
  0x1f   :  { %v529_v1 = vsel %vm2113_vm4, %v383_v58, %v528_v53  ;;  %v532_v2 = vsel %vm2125_vm5, %v384_v59, %v531_v55  ;;  %v332_v3 = vrot.slane %v330_v60, 7  ;;  %v146_v7 = vadd.f32 %v1756_v63, %v1740_v57 }
  0x20   :  { %530 = vst [vmem:[#allocation2 + $0x58] sm:$0xf] %v529_v1  ;;  %533 = vst [vmem:[#allocation2 + $0x5c] sm:$0x1] %v532_v2  ;;  %v185_v6 = vadd.f32 %v1851_v51, %v169_v62  ;;  %v580_v8 = vld [vmem:[#allocation2 + $0x10] sm:$0xf]  ;;  %v1804_v27 = vunpack.c.h.bf16 %v2109_v4  ;;  %v1820_v20 = vunpack.c.h.bf16 %v2120_v15  ;;  %v1836_v38 = vunpack.c.h.bf16 %v2135_v36 }
  0x21   :  { %v581_v9 = vld [vmem:[#allocation2 + $0x14] sm:$0x1]  ;;  %v335_v10 = vor.u32 %v333_v61, %v332_v3  ;;  %v336_v12 = vrot.slane %v332_v3, 4  ;;  %v2166_v13 = vcombine.low %v580_v8, %v580_v8  ;;  %v578_v14 = vld [vmem:[#allocation2 + $0x8] sm:$0xf]  ;;  %v162_v18 = vadd.f32 %v1772_v0, %v146_v7 }
  0x22   :  { %v579_v16 = vld [vmem:[#allocation2 + $0xc] sm:$0x1]  ;;  %v201_v17 = vmul.f32 0.25, %v185_v6  ;;  %v1675_v22 = vcombine.low %v578_v14, %v578_v14  ;;  %v2180_v15 = vld [vmem:[%s3154_s0 + $0x10] sm:$0xff]   ;;  %v2185_v29 = vcombine.low %v580_v8, %v581_v9  ;;  %v1852_v42 = vunpack.c.h.bf16 %v2140_v37 }
  0x23   :  { %v2169_v23 = vcombine.low %v578_v14, %v579_v16  ;;  %v493_v24 = vsel %vm2113_vm4, %v335_v10, %v492_v21  ;;  %v496_v25 = vsel %vm2125_vm5, %v336_v12, %v495_v5  ;;  %910 = vrot.lane.b32.xlu1 %v2166_v13, %s1991_s19  ;;  %v178_v31 = vadd.f32 %v1788_v26, %v162_v18  ;;  %v543_v51 = vld [vmem:[#allocation2 + $0x6c] sm:$0x1]  ;;  %v2220_v3 = vld [vmem:[%s3154_s0 + $0x30] sm:$0xff]   ;;  %v498_v16 = vld [vmem:[#allocation2 + $0x20] sm:$0xf] }
  0x24   :  { %v600_v32 = vld [vmem:[#allocation2 + $0x60] sm:$0xf]  ;;  %494 = vst [vmem:[#allocation2 + $0x18] sm:$0xf] %v493_v24  ;;  %497 = vst [vmem:[#allocation2 + $0x1c] sm:$0x1] %v496_v25  ;;  %v1727_v4 = vpack.c.bf16 %v201_v17, %v201_v17  ;;  %908 = vrot.lane.b32.xlu0 %v1675_v22, %s1991_s19  ;;  %v154_v43 = vadd.f32 %v1820_v20, %v1804_v27  ;;  %v1743_v44 = vunpack.c.l.bf16 %v2180_v15  ;;  %v1744_v26 = vunpack.c.h.bf16 %v2180_v15 }
  0x25   :  { %v2183_v28 = vcombine.low %v600_v32, %v600_v32  ;;  %v601_v30 = vld [vmem:[#allocation2 + $0x64] sm:$0x1]  ;;  %v706_v33 = vshll.u32 %v2169_v23, 16  ;;  %v841_v40 = vrot.slane %v2169_v23, 1  ;;  %v2197_v36 = vrot.slane %v2185_v29, 1  ;;  %v2227_v8 = vld [vmem:[%s3154_s0 + $0x50] sm:$0xff]  }
  0x26   :  { %v394_v34 = vshrl.u32 %v1727_v4, 16  ;;  %v397_v35 = vshll.u32 %v1727_v4, 16  ;;  %v1669_v46 = vcombine.low %v600_v32, %v601_v30  ;;  %v704_v50 = vshrl.u32 %v2169_v23, 16  ;;  %v2239_v20 = vld [vmem:[%s3154_s0 + $0x70] sm:$0xff]   ;;  %v501_v32 = vld [vmem:[#allocation2 + $0x24] sm:$0x1] }
  0x27   :  { %v598_v39 = vld [vmem:[#allocation2 + $0x58] sm:$0xf]  ;;  %v599_v41 = vld [vmem:[#allocation2 + $0x5c] sm:$0x1]  ;;  %926 = vrot.lane.b32.xlu1 %v2183_v28, %s1991_s19  ;;  %v713_v37 = vshll.u32 %v2185_v29, 16  ;;  %v194_v52 = vmul.f32 0.25, %v178_v31  ;;  %v170_v62 = vadd.f32 %v1836_v38, %v154_v43  ;;  %v1759_v18 = vunpack.c.l.bf16 %v2220_v3 }
  0x28   :  { %v1683_v45 = vcombine.low %v598_v39, %v598_v39  ;;  %v2194_v47 = vcombine.low %v598_v39, %v599_v41  ;;  %v396_v48 = vrot.slane %v394_v34, 7  ;;  %v708_v53 = vrot.slane %v706_v33, 1  ;;  %v1878_v34 = vld [vmem:[%s3154_s0 + $0x90] sm:$0xff]  }
  0x29   :  { %v769_v56 = vshll.u32 %v1669_v46, 16  ;;  %v711_v60 = vshrl.u32 %v2185_v29, 16  ;;  %v1720_v61 = vpack.c.bf16 %v194_v52, %v194_v52  ;;  %v2222_v21 = vrot.slane %v1669_v46, 1 }
  0x2a   :  { %924 = vrot.lane.b32.xlu0 %v1683_v45, %s1991_s19  ;;  %v399_v54 = vor.u32 %v397_v35, %v396_v48  ;;  %v400_v55 = vrot.slane %v396_v48, 4  ;;  %v849_v57 = vrot.slane %v2194_v47, 1  ;;  %v762_v2 = vshll.u32 %v2194_v47, 16  ;;  %v1882_v35 = vld [vmem:[%s3154_s0 + $0xb0] sm:$0xff]  }
  0x2b   :  { %v2203_v58 = vld [vmem:[#allocation2 + $0x18] sm:$0xf]  ;;  %v583_v59 = vld [vmem:[#allocation2 + $0x1c] sm:$0x1]  ;;  %858 = vrot.lane.b32.xlu1 %v841_v40, %s1989_s9  ;;  %v715_v5 = vrot.slane %v713_v37, 1  ;;  %v338_v6 = vshrl.u32 %v1720_v61, 16  ;;  %v2231_v9 = vor.u32 %v708_v53, %v704_v50  ;;  %v186_v17 = vadd.f32 %v1852_v42, %v170_v62 }
  0x2c   :  { %v2210_v63 = vcombine.low %v2203_v58, %v583_v59  ;;  %v541_v0 = vsel %vm2113_vm4, %v399_v54, %v540_v49  ;;  %v544_v1 = vsel %vm2125_vm5, %v400_v55, %v543_v51  ;;  %v341_v7 = vshll.u32 %v1720_v61, 16  ;;  %v1886_v49 = vld [vmem:[%s3154_s0 + $0xd0] sm:$0xff]  }
  0x2d   :  { %542 = vst [vmem:[#allocation2 + $0x68] sm:$0xf] %v541_v0  ;;  %545 = vst [vmem:[#allocation2 + $0x6c] sm:$0x1] %v544_v1  ;;  %v767_v10 = vshrl.u32 %v1669_v46, 16  ;;  %v771_v12 = vrot.slane %v769_v56, 1  ;;  %v1775_v4 = vunpack.c.l.bf16 %v2227_v8  ;;  %v2249_v29 = vor.u32 %v715_v5, %v711_v60 }
  0x2e   :  { %860 = vrot.lane.b32.xlu0 %v2197_v36, %s1989_s9  ;;  %v720_v27 = vshll.u32 %v2210_v63, 16  ;;  %v340_v14 = vrot.slane %v338_v6, 7  ;;  %v2245_v22 = vrot.slane %v2210_v63, 1  ;;  %v760_v24 = vshrl.u32 %v2194_v47, 16  ;;  %v1890_v0 = vld [vmem:[%s3154_s0 + $0xf0] sm:$0xff]  }
  0x2f   :  { %874 = vrot.lane.b32.xlu1 %v849_v57, %s1989_s9  ;;  %v764_v25 = vrot.slane %v762_v2, 1  ;;  %v202_v33 = vmul.f32 0.25, %v186_v17  ;;  %v2259_v38 = vor.u32 %v771_v12, %v767_v10  ;;  %v718_v39 = vshrl.u32 %v2210_v63, 16  ;;  %v549_v10 = vld [vmem:[#allocation2 + $0x74] sm:$0x1] }
  0x30   :  { %v343_v30 = vor.u32 %v341_v7, %v340_v14  ;;  %v344_v31 = vrot.slane %v340_v14, 4  ;;  %v1791_v41 = vunpack.c.l.bf16 %v2239_v20  ;;  %v147_v42 = vadd.f32 %v1759_v18, %v1743_v44 }
  0x31   :  { %v722_v43 = vrot.slane %v720_v27, 1  ;;  %v1728_v48 = vpack.c.bf16 %v202_v33, %v202_v33  ;;  %v2276_v37 = vor.u32 %v764_v25, %v760_v24  ;;  %v1807_v52 = vunpack.c.l.bf16 %v1878_v34  ;;  %v2296_v25 = vld [vmem:[%s3154_s0 + $0x18] sm:$0xff]  }
  0x32   :  { %876 = vrot.lane.b32.xlu0 %v2222_v21, %s1989_s9  ;;  %v499_v45 = vsel %vm2113_vm4, %v343_v30, %v498_v16  ;;  %v502_v46 = vsel %vm2125_vm5, %v344_v31, %v501_v32  ;;  %v163_v44 = vadd.f32 %v1775_v4, %v147_v42  ;;  %v1823_v53 = vunpack.c.l.bf16 %v1882_v35  ;;  %v2305_v30 = vld [vmem:[%s3154_s0 + $0x38] sm:$0xff]  }
  0x33   :  { %862 = vrot.lane.b32.xlu1 %v2245_v22, %s1989_s9  ;;  %500 = vst [vmem:[#allocation2 + $0x20] sm:$0xf] %v499_v45  ;;  %503 = vst [vmem:[#allocation2 + $0x24] sm:$0x1] %v502_v46  ;;  %v402_v55 = vshrl.u32 %v1728_v48, 16  ;;  %v405_v56 = vshll.u32 %v1728_v48, 16  ;;  %v1760_v59 = vunpack.c.h.bf16 %v2220_v3  ;;  %v1808_v61 = vunpack.c.h.bf16 %v1878_v34 }
  0x34   :  { %v2274_v50 = vld [vmem:[#allocation2 + $0x68] sm:$0xf]  ;;  %v603_v51 = vld [vmem:[#allocation2 + $0x6c] sm:$0x1]  ;;  %v179_v60 = vadd.f32 %v1791_v41, %v163_v44  ;;  %v1824_v62 = vunpack.c.h.bf16 %v1882_v35  ;;  %v1839_v63 = vunpack.c.l.bf16 %v1886_v49  ;;  %v2287_v2 = vor.u32 %v722_v43, %v718_v39  ;;  %v546_v3 = vld [vmem:[#allocation2 + $0x70] sm:$0xf] }
  0x35   :  { %v1670_v54 = vcombine.low %v2274_v50, %v603_v51  ;;  %v404_v5 = vrot.slane %v402_v55, 7  ;;  %v1776_v6 = vunpack.c.h.bf16 %v2227_v8  ;;  %v1792_v12 = vunpack.c.h.bf16 %v2239_v20  ;;  %v2318_v48 = vld [vmem:[%s3154_s0 + $0x58] sm:$0xff]   ;;  %v504_v44 = vld [vmem:[#allocation2 + $0x28] sm:$0xf] }
  0x36   :  { %810 = vrot.lane.b32.xlu0 %v2231_v9, %s1990_s14  ;;  %v195_v27 = vmul.f32 0.25, %v179_v60  ;;  %v155_v14 = vadd.f32 %v1823_v53, %v1807_v52  ;;  %v1840_v18 = vunpack.c.h.bf16 %v1886_v49  ;;  %v1855_v24 = vunpack.c.l.bf16 %v1890_v0  ;;  %v507_v53 = vld [vmem:[#allocation2 + $0x2c] sm:$0x1] }
  0x37   :  { %v2285_v1 = vrot.slane %v1670_v54, 1  ;;  %v776_v7 = vshll.u32 %v1670_v54, 16  ;;  %v407_v16 = vor.u32 %v405_v56, %v404_v5  ;;  %v408_v17 = vrot.slane %v404_v5, 4 }
  0x38   :  { %v1721_v8 = vpack.c.bf16 %v195_v27, %v195_v27  ;;  %v171_v32 = vadd.f32 %v1839_v63, %v155_v14  ;;  %v148_v20 = vadd.f32 %v1760_v59, %v1744_v26  ;;  %v156_v4 = vadd.f32 %v1824_v62, %v1808_v61 }
  0x39   :  { %878 = vrot.lane.b32.xlu1 %v2285_v1, %s1989_s9  ;;  %v774_v31 = vshrl.u32 %v1670_v54, 16  ;;  %v547_v33 = vsel %vm2113_vm4, %v407_v16, %v546_v3  ;;  %v550_v34 = vsel %vm2125_vm5, %v408_v17, %v549_v10  ;;  %v1856_v35 = vunpack.c.h.bf16 %v1890_v0 }
  0x3a   :  { %812 = vrot.lane.b32.xlu0 %v2249_v29, %s1990_s14  ;;  %v778_v39 = vrot.slane %v776_v7, 1  ;;  %548 = vst [vmem:[#allocation2 + $0x70] sm:$0xf] %v547_v33  ;;  %551 = vst [vmem:[#allocation2 + $0x74] sm:$0x1] %v550_v34  ;;  %v346_v41 = vshrl.u32 %v1721_v8, 16  ;;  %v1747_v26 = vunpack.c.l.bf16 %v2296_v25  ;;  %v187_v42 = vadd.f32 %v1855_v24, %v171_v32 }
  0x3b   :  { %v349_v15 = vshll.u32 %v1721_v8, 16  ;;  %v164_v43 = vadd.f32 %v1776_v6, %v148_v20  ;;  %v172_v45 = vadd.f32 %v1840_v18, %v156_v4  ;;  %v1763_v46 = vunpack.c.l.bf16 %v2305_v30  ;;  %v585_v52 = vld [vmem:[#allocation2 + $0x24] sm:$0x1]  ;;  %v584_v63 = vld [vmem:[#allocation2 + $0x20] sm:$0xf]  ;;  %v2334_v6 = vld [vmem:[%s3154_s0 + $0x78] sm:$0xff]  }
  0x3c   :  { %v2324_v49 = vcombine.low %v2203_v58, %v2203_v58  ;;  %v348_v51 = vrot.slane %v346_v41, 7  ;;  %v203_v54 = vmul.f32 0.25, %v187_v42  ;;  %v2326_v59 = vor.u32 %v778_v39, %v774_v31  ;;  %v2354_v32 = vld [vmem:[%s3154_s0 + $0x98] sm:$0xff]  }
  0x3d   :  { %826 = vrot.lane.b32.xlu1 %v2276_v37, %s1990_s14  ;;  %v180_v55 = vadd.f32 %v1792_v12, %v164_v43  ;;  %v188_v56 = vadd.f32 %v1856_v35, %v172_v45  ;;  %v1779_v62 = vunpack.c.l.bf16 %v2318_v48  ;;  %v149_v7 = vadd.f32 %v1763_v46, %v1747_v26  ;;  %v2359_v20 = vld [vmem:[%s3154_s0 + $0xb8] sm:$0xff]   ;;  %v510_v46 = vld [vmem:[#allocation2 + $0x30] sm:$0xf] }
  0x3e   :  { %828 = vrot.lane.b32.xlu0 %v2259_v38, %s1990_s14  ;;  %v351_v60 = vor.u32 %v349_v15, %v348_v51  ;;  %v352_v61 = vrot.slane %v348_v51, 4  ;;  %v1729_v0 = vpack.c.bf16 %v203_v54, %v203_v54  ;;  %v2340_v3 = vcombine.low %v2274_v50, %v2274_v50  ;;  %v552_v41 = vld [vmem:[#allocation2 + $0x78] sm:$0xf]  ;;  %v555_v15 = vld [vmem:[#allocation2 + $0x7c] sm:$0x1] }
  0x3f   :  { %v196_v58 = vmul.f32 0.25, %v180_v55  ;;  %v204_v5 = vmul.f32 0.25, %v188_v56  ;;  %v2342_v10 = vcombine.low %v584_v63, %v585_v52  ;;  %v2348_v24 = vcombine.low %v584_v63, %v584_v63  ;;  %v513_v54 = vld [vmem:[#allocation2 + $0x34] sm:$0x1] }
  0x40   :  { %v505_v12 = vsel %vm2113_vm4, %v351_v60, %v504_v44  ;;  %v508_v27 = vsel %vm2125_vm5, %v352_v61, %v507_v53  ;;  %v410_v14 = vshrl.u32 %v1729_v0, 16  ;;  %v413_v16 = vshll.u32 %v1729_v0, 16  ;;  %v2371_v44 = vld [vmem:[%s3154_s0 + $0xd8] sm:$0xff]  }
  0x41   :  { %814 = vrot.lane.b32.xlu1 %v2287_v2, %s1990_s14  ;;  %506 = vst [vmem:[#allocation2 + $0x28] sm:$0xf] %v505_v12  ;;  %509 = vst [vmem:[#allocation2 + $0x2c] sm:$0x1] %v508_v27  ;;  %v1722_v17 = vpack.c.bf16 %v196_v58, %v196_v58  ;;  %v1730_v18 = vpack.c.bf16 %v204_v5, %v204_v5  ;;  %v1795_v8 = vunpack.c.l.bf16 %v2334_v6  ;;  %v2363_v4 = vld [vmem:[#allocation2 + $0x70] sm:$0xf]  ;;  %v1811_v56 = vunpack.c.l.bf16 %v2354_v32 }
  0x42   :  { %912 = vrot.lane.b32.xlu0 %v2324_v49, %s1991_s19  ;;  %v165_v50 = vadd.f32 %v1779_v62, %v149_v7  ;;  %3174 = vst [vmem:[#allocation3_spill] sm:$0xff] %v2363_v4  ;;  %v412_v31 = vrot.slane %v410_v14, 7  ;;  %v727_v39 = vshll.u32 %v2342_v10, 16  ;;  %v605_v52 = vld [vmem:[#allocation2 + $0x74] sm:$0x1]  ;;  %v2375_v53 = vcombine.low %v2363_v4, %v2363_v4  ;;  %v2382_v61 = vld [vmem:[%s3154_s0 + $0xf8] sm:$0xff]  }
  0x43   :  { %v354_v33 = vshrl.u32 %v1722_v17, 16  ;;  %v357_v34 = vshll.u32 %v1722_v17, 16  ;;  %v418_v35 = vshrl.u32 %v1730_v18, 16  ;;  %v421_v26 = vshll.u32 %v1730_v18, 16  ;;  %v558_v5 = vld [vmem:[#allocation2 + $0x80] sm:$0xf] }
  0x44   :  { %v415_v42 = vor.u32 %v413_v16, %v412_v31  ;;  %v416_v43 = vrot.slane %v412_v31, 4  ;;  %v181_v55 = vadd.f32 %v1795_v8, %v165_v50  ;;  %v1827_v60 = vunpack.c.l.bf16 %v2359_v20  ;;  %v561_v7 = vld [vmem:[#allocation2 + $0x84] sm:$0x1]  ;;  %s1993_s0 = smov 20  }
  0x45   :  { %830 = vrot.lane.b32.xlu1 %v2326_v59, %s1990_s14  ;;  %v356_v45 = vrot.slane %v354_v33, 7  ;;  %v420_v51 = vrot.slane %v418_v35, 7  ;;  %v1843_v16 = vunpack.c.l.bf16 %v2371_v44  ;;  %v2394_v17 = vcombine.low %v2363_v4, %v605_v52 }
  0x46   :  { %928 = vrot.lane.b32.xlu0 %v2340_v3, %s1991_s19  ;;  %v553_v62 = vsel %vm2113_vm4, %v415_v42, %v552_v41  ;;  %v556_v63 = vsel %vm2125_vm5, %v416_v43, %v555_v15  ;;  %v197_v14 = vmul.f32 0.25, %v181_v55  ;;  %v1859_v50 = vunpack.c.l.bf16 %v2382_v61 }
  0x47   :  { %v359_v0 = vor.u32 %v357_v34, %v356_v45  ;;  %v360_v58 = vrot.slane %v356_v45, 4  ;;  %554 = vst [vmem:[#allocation2 + $0x78] sm:$0xf] %v553_v62  ;;  %557 = vst [vmem:[#allocation2 + $0x7c] sm:$0x1] %v556_v63  ;;  %v423_v12 = vor.u32 %v421_v26, %v420_v51  ;;  %v424_v27 = vrot.slane %v420_v51, 4 }
  0x48   :  { %v1723_v33 = vpack.c.bf16 %v197_v14, %v197_v14  ;;  %v157_v34 = vadd.f32 %v1827_v60, %v1811_v56  ;;  %v1748_v26 = vunpack.c.h.bf16 %v2296_v25  ;;  %v725_v42 = vshrl.u32 %v2342_v10, 16  ;;  %v519_v60 = vld [vmem:[#allocation2 + $0x3c] sm:$0x1]  ;;  %v2484_v11 = vld [vmem:[#allocation2 + $0x28] sm:$0xf] }
  0x49   :  { %914 = vrot.lane.b32.xlu1 %v2348_v24, %s1991_s19  ;;  %v511_v18 = vsel %vm2113_vm4, %v359_v0, %v510_v46  ;;  %v514_v8 = vsel %vm2125_vm5, %v360_v58, %v513_v54  ;;  %v562_v31 = vsel %vm2125_vm5, %v424_v27, %v561_v7  ;;  %v729_v43 = vrot.slane %v727_v39, 1  ;;  %3175 = vst [vmem:[#allocation4_spill] sm:$0xff] %v2484_v11 }
  0x4a   :  { %960 = vrot.lane.b32.xlu0 %v2231_v9, %s1992_s28  ;;  %512 = vst [vmem:[#allocation2 + $0x30] sm:$0xf] %v511_v18  ;;  %515 = vst [vmem:[#allocation2 + $0x34] sm:$0x1] %v514_v8  ;;  %v559_v9 = vsel %vm2113_vm4, %v423_v12, %v558_v5  ;;  %v362_v35 = vshrl.u32 %v1723_v33, 16  ;;  %v365_v41 = vshll.u32 %v1723_v33, 16  ;;  %v173_v15 = vadd.f32 %v1843_v16, %v157_v34 }
  0x4b   :  { %560 = vst [vmem:[#allocation2 + $0x80] sm:$0xf] %v559_v9  ;;  %563 = vst [vmem:[#allocation2 + $0x84] sm:$0x1] %v562_v31  ;;  %v1764_v45 = vunpack.c.h.bf16 %v2305_v30  ;;  %v783_v46 = vshll.u32 %v2394_v17, 16  ;;  %v1780_v54 = vunpack.c.h.bf16 %v2318_v48  ;;  %v1812_v55 = vunpack.c.h.bf16 %v2354_v32 }
  0x4c   :  { %v364_v51 = vrot.slane %v362_v35, 7  ;;  %v189_v52 = vadd.f32 %v1859_v50, %v173_v15  ;;  %v1828_v56 = vunpack.c.h.bf16 %v2359_v20  ;;  %v516_v30 = vld [vmem:[#allocation2 + $0x38] sm:$0xf]  ;;  %v2420_v62 = vor.u32 %v729_v43, %v725_v42  ;;  %v564_v9 = vld [vmem:[#allocation2 + $0x88] sm:$0xf] }
  0x4d   :  { %930 = vrot.lane.b32.xlu1 %v2375_v53, %s1991_s19  ;;  %v781_v63 = vshrl.u32 %v2394_v17, 16  ;;  %v785_v0 = vrot.slane %v783_v46, 1  ;;  %v1796_v58 = vunpack.c.h.bf16 %v2334_v6  ;;  %v1844_v32 = vunpack.c.h.bf16 %v2371_v44  ;;  %v567_v31 = vld [vmem:[#allocation2 + $0x8c] sm:$0x1] }
  0x4e   :  { %976 = vrot.lane.b32.xlu0 %v2276_v37, %s1992_s28  ;;  %v150_v37 = vadd.f32 %v1764_v45, %v1748_v26  ;;  %v367_v25 = vor.u32 %v365_v41, %v364_v51  ;;  %v368_v39 = vrot.slane %v364_v51, 4  ;;  %v205_v48 = vmul.f32 0.25, %v189_v52  ;;  %v522_v52 = vld [vmem:[#allocation2 + $0x40] sm:$0xf] }
  0x4f   :  { %v158_v27 = vadd.f32 %v1828_v56, %v1812_v55  ;;  %v1860_v44 = vunpack.c.h.bf16 %v2382_v61  ;;  %v2436_v16 = vor.u32 %v785_v0, %v781_v63  ;;  %v570_v56 = vld [vmem:[#allocation2 + $0x90] sm:$0xf]  ;;  %v2472_v0 = vrot.slane %v2394_v17, 1 }
  0x50   :  { %v166_v5 = vadd.f32 %v1780_v54, %v150_v37  ;;  %v517_v20 = vsel %vm2113_vm4, %v367_v25, %v516_v30  ;;  %v520_v7 = vsel %vm2125_vm5, %v368_v39, %v519_v60  ;;  %v1731_v12 = vpack.c.bf16 %v205_v48, %v205_v48  ;;  %v525_v54 = vld [vmem:[#allocation2 + $0x44] sm:$0x1]  ;;  %v573_v25 = vld [vmem:[#allocation2 + $0x94] sm:$0x1] }
  0x51   :  { %962 = vrot.lane.b32.xlu1 %v2249_v29, %s1992_s28  ;;  %518 = vst [vmem:[#allocation2 + $0x38] sm:$0xf] %v517_v20  ;;  %521 = vst [vmem:[#allocation2 + $0x3c] sm:$0x1] %v520_v7  ;;  %v174_v50 = vadd.f32 %v1844_v32, %v158_v27  ;;  %v2490_v19 = vcombine.low %v2484_v11, %v2484_v11  ;;  %vm1522_vm6 = vcmask 1041408   ;;  %vm1150_vm7 = vcmask 31744  }
  0x52   :  { %964 = vrot.lane.b32.xlu0 %v2287_v2, %s1992_s28  ;;  %v426_v6 = vshrl.u32 %v1731_v12, 16  ;;  %v429_v14 = vshll.u32 %v1731_v12, 16  ;;  %v182_v8 = vadd.f32 %v1796_v58, %v166_v5  ;;  %vm1199_vm8 = vcmask 64512  }
  0x53   :  { %v190_v41 = vadd.f32 %v1860_v44, %v174_v50  ;;  %v2562_v50 = vld [vmem:[#allocation2 + $0x80] sm:$0xf]  ;;  %vm1232_vm9 = vcmask 97280   ;;  %vm1265_vm10 = vcmask 130048   ;;  %vm1298_vm11 = vcmask 162816  }
  0x54   :  { %v428_v18 = vrot.slane %v426_v6, 7  ;;  %v198_v35 = vmul.f32 0.25, %v182_v8  ;;  %v2548_v6 = vld [vmem:[#allocation2 + $0x30] sm:$0xf]  ;;  %v1978_v8 = vld [vmem:[%s3155_s1] sm:$0xff]   ;;  %3178 = vst [vmem:[#allocation7_spill] sm:$0xff] %v2562_v50 }
  0x55   :  { %978 = vrot.lane.b32.xlu1 %v2259_v38, %s1992_s28  ;;  %v206_v42 = vmul.f32 0.25, %v190_v41  ;;  %3177 = vst [vmem:[#allocation6_spill] sm:$0xff] %v2548_v6  ;;  %vm1331_vm12 = vcmask 195584   ;;  %vm1364_vm13 = vcmask 228352   ;;  %vm1397_vm14 = vcmask 261120  }
  0x56   :  { %980 = vrot.lane.b32.xlu0 %v2326_v59, %s1992_s28  ;;  %v431_v33 = vor.u32 %v429_v14, %v428_v18  ;;  %v432_v34 = vrot.slane %v428_v18, 4  ;;  %v1724_v26 = vpack.c.bf16 %v198_v35, %v198_v35  ;;  %v589_v14 = vld [vmem:[#allocation2 + $0x34] sm:$0x1]  ;;  %vm1497_vm15 = vcmask 293888  }
  0x57   :  { %v1732_v43 = vpack.c.bf16 %v206_v42, %v206_v42 }
  0x58   :  { %v565_v61 = vsel %vm2113_vm4, %v431_v33, %v564_v9  ;;  %v568_v15 = vsel %vm2125_vm5, %v432_v34, %v567_v31  ;;  %v370_v23 = vshrl.u32 %v1724_v26, 16  ;;  %v609_v9 = vld [vmem:[#allocation2 + $0x84] sm:$0x1]  ;;  %v2571_v33 = vld [vmem:[#allocation2 + $0x38] sm:$0xf] }
  0x59   :  { %966 = vrot.lane.b32.xlu1 %v2420_v62, %s1992_s28  ;;  %566 = vst [vmem:[#allocation2 + $0x88] sm:$0xf] %v565_v61  ;;  %569 = vst [vmem:[#allocation2 + $0x8c] sm:$0x1] %v568_v15  ;;  %v434_v46 = vshrl.u32 %v1732_v43, 16  ;;  %v437_v51 = vshll.u32 %v1732_v43, 16  ;;  %v1673_v31 = vcombine.low %v2562_v50, %v609_v9  ;;  %v2683_v9 = vcombine.low %v2571_v33, %v2571_v33 }
  0x5a   :  { %994 = vrot.lane.b32.xlu0 %v841_v40, %s1993_s0  ;;  %v373_v40 = vshll.u32 %v1724_v26, 16  ;;  %v372_v45 = vrot.slane %v370_v23, 7  ;;  %3179 = vst [vmem:[#allocation8_spill] sm:$0xff] %v2571_v33  ;;  %v591_v34 = vld [vmem:[#allocation2 + $0x3c] sm:$0x1] }
  0x5b   :  { %v436_v47 = vrot.slane %v434_v46, 7  ;;  %v797_v15 = vshll.u32 %v1673_v31, 16 }
  0x5c   :  { %v375_v37 = vor.u32 %v373_v40, %v372_v45  ;;  %v376_v55 = vrot.slane %v372_v45, 4 }
  0x5d   :  { %982 = vrot.lane.b32.xlu1 %v2436_v16, %s1992_s28  ;;  %v439_v60 = vor.u32 %v437_v51, %v436_v47  ;;  %v440_v63 = vrot.slane %v436_v47, 4 }
  0x5e   :  { %1010 = vrot.lane.b32.xlu0 %v849_v57, %s1993_s0  ;;  %v2455_v57 = vrot.slane %v2342_v10, 1  ;;  %v523_v39 = vsel %vm2113_vm4, %v375_v37, %v522_v52  ;;  %v526_v30 = vsel %vm2125_vm5, %v376_v55, %v525_v54  ;;  %v795_v52 = vshrl.u32 %v1673_v31, 16 }
  0x5f   :  { %524 = vst [vmem:[#allocation2 + $0x40] sm:$0xf] %v523_v39  ;;  %527 = vst [vmem:[#allocation2 + $0x44] sm:$0x1] %v526_v30  ;;  %v571_v10 = vsel %vm2113_vm4, %v439_v60, %v570_v56  ;;  %v574_v48 = vsel %vm2125_vm5, %v440_v63, %v573_v25  ;;  %v799_v54 = vrot.slane %v797_v15, 1 }
  0x60   :  { %572 = vst [vmem:[#allocation2 + $0x90] sm:$0xf] %v571_v10  ;;  %575 = vst [vmem:[#allocation2 + $0x94] sm:$0x1] %v574_v48  ;;  %v2582_v26 = vld [vmem:[#allocation2 + $0x88] sm:$0xf] }
  0x61   :  { %996 = vrot.lane.b32.xlu1 %v2197_v36, %s1993_s0  ;;  %3180 = vst [vmem:[#allocation9_spill] sm:$0xff] %v2582_v26  ;;  %v611_v42 = vld [vmem:[#allocation2 + $0x8c] sm:$0x1]  ;;  %v2609_v30 = vor.u32 %v799_v54, %v795_v52 }
  0x62   :  { %998 = vrot.lane.b32.xlu0 %v2245_v22, %s1993_s0  ;;  %v1674_v45 = vcombine.low %v2582_v26, %v611_v42 }
  0x64   :  { %v804_v25 = vshll.u32 %v1674_v45, 16  ;;  %v802_v10 = vshrl.u32 %v1674_v45, 16 }
  0x65   :  { %1012 = vrot.lane.b32.xlu1 %v2222_v21, %s1993_s0 }
  0x66   :  { %1014 = vrot.lane.b32.xlu0 %v2285_v1, %s1993_s0  ;;  %v806_v48 = vrot.slane %v804_v25, 1  ;;  %v593_v15 = vld [vmem:[#allocation2 + $0x44] sm:$0x1] }
  0x67   :  { %v612_v42 = vld [vmem:[#allocation2 + $0x90] sm:$0xf] }
  0x68   :  { %v1690_v54 = vcombine.low %v612_v42, %v612_v42 }
  0x69   :  { %1000 = vrot.lane.b32.xlu1 %v2455_v57, %s1993_s0 }
  0x6a   :  { %1032 = vrot.lane.b32.xlu0 %v2166_v13, %s1994_s29  ;;  %v587_v13 = vld [vmem:[#allocation2 + $0x2c] sm:$0x1] }
  0x6d   :  { %1016 = vrot.lane.b32.xlu1 %v2472_v0, %s1993_s0 }
  0x6e   :  { %1048 = vrot.lane.b32.xlu0 %v2183_v28, %s1994_s29  ;;  %v2494_v28 = vld [vmem:[#allocation2 + $0x78] sm:$0xf] }
  0x6f   :  { %3176 = vst [vmem:[#allocation5_spill] sm:$0xff] %v2494_v28 }
  0x71   :  { %1034 = vrot.lane.b32.xlu1 %v2324_v49, %s1994_s29  ;;  %v2497_v49 = vcombine.low %v2484_v11, %v587_v13 }
  0x72   :  { %1036 = vrot.lane.b32.xlu0 %v2348_v24, %s1994_s29  ;;  %v2503_v24 = vcombine.low %v2494_v28, %v2494_v28 }
  0x73   :  { %v734_v17 = vshll.u32 %v2497_v49, 16  ;;  %v732_v58 = vshrl.u32 %v2497_v49, 16  ;;  %v2589_v40 = vrot.slane %v2497_v49, 1 }
  0x75   :  { %1050 = vrot.lane.b32.xlu1 %v2340_v3, %s1994_s29  ;;  %v607_v3 = vld [vmem:[#allocation2 + $0x7c] sm:$0x1]  ;;  %v736_v5 = vrot.slane %v734_v17, 1 }
  0x76   :  { %1052 = vrot.lane.b32.xlu0 %v2375_v53, %s1994_s29  ;;  %v2508_v53 = vcombine.low %v2494_v28, %v607_v3  ;;  %v2625_v3 = vor.u32 %v806_v48, %v802_v10 }
  0x77   :  { %v2523_v32 = vor.u32 %v736_v5, %v732_v58 }
  0x78   :  { %v2603_v55 = vrot.slane %v2508_v53, 1 }
  0x79   :  { %1038 = vrot.lane.b32.xlu1 %v2490_v19, %s1994_s29 }
  0x7a   :  { %1084 = vrot.lane.b32.xlu0 %v2249_v29, %s1995_s30  ;;  %v790_v29 = vshll.u32 %v2508_v53, 16 }
  0x7c   :  { %v792_v7 = vrot.slane %v790_v29, 1 }
  0x7d   :  { %1054 = vrot.lane.b32.xlu1 %v2503_v24, %s1994_s29 }
  0x7e   :  { %1100 = vrot.lane.b32.xlu0 %v2259_v38, %s1995_s30  ;;  %v788_v38 = vshrl.u32 %v2508_v53, 16 }
  0x81   :  { %1086 = vrot.lane.b32.xlu1 %v2287_v2, %s1995_s30  ;;  %v2532_v2 = vor.u32 %v792_v7, %v788_v38 }
  0x82   :  { %1088 = vrot.lane.b32.xlu0 %v2420_v62, %s1995_s30  ;;  %v2525_v20 = vpop.permute.xlu0 %856 }
  0x85   :  { %1102 = vrot.lane.b32.xlu1 %v2326_v59, %s1995_s30  ;;  %v1976_v59 = vld [vmem:[%s3155_s1 + $0x10] ss:$0 sps:$4 sm:$0x33]  }
  0x86   :  { %1104 = vrot.lane.b32.xlu0 %v2436_v16, %s1995_s30  ;;  %1931 = vmatprep.subr.msk.bf16.mxu0 %vm1522_vm6, %v1976_v59  ;;  %v1524_v27 = vsel %vm1522_vm6, %v1976_v59, 0 }
  0x87   :  { %1932 = vmatprep.subr.msk.bf16.mxu1 %vm1522_vm6, %v1976_v59  ;;  %1904 = vmatpush3.bf16.msra.mxu0 %v1524_v27 }
  0x88   :  { %1928 = vmatpush3.bf16.msra.mxu1 %v1524_v27 }
  0x89   :  { %1090 = vrot.lane.b32.xlu1 %v2523_v32, %s1995_s30 }
  0x8a   :  { %1118 = vrot.lane.b32.xlu0 %v2197_v36, %s1996_s4  ;;  %v2539_v12 = vpop.permute.xlu0 %872  ;;  %v1977_v36 = vld [vmem:[%s3155_s1 + $0x8] sm:$0xff]  }
  0x8b   :  { %1905 = vmatprep.subr.bf16.mxu0 %v1977_v36  ;;  %1926 = vmatprep.subr.bf16.mxu1 %v1977_v36 }
  0x8c   :  { %1906 = vmatpush3.bf16.msra.mxu0 %v1977_v36  ;;  %1929 = vmatpush3.bf16.msra.mxu1 %v1977_v36  ;;  %v2665_v36 = vrot.slane %v1674_v45, 1 }
  0x8d   :  { %1106 = vrot.lane.b32.xlu1 %v2532_v2, %s1995_s30  ;;  %1907 = vmatprep.subr.bf16.mxu0 %v1978_v8 }
  0x8e   :  { %1134 = vrot.lane.b32.xlu0 %v2222_v21, %s1996_s4  ;;  %v2550_v44 = vpop.permute.xlu1 %824  ;;  %v2554_v18 = vpop.permute.xlu0 %808  ;;  %v1665_v21 = vcombine.low %v2548_v6, %v589_v14  ;;  %1927 = vmatprep.subr.bf16.mxu1 %v1978_v8  ;;  %3182 = vst [vmem:[#allocation11_spill] sm:$0xff] %v2665_v36 }
  0x90   :  { %1908 = vmatpush3.bf16.msra.mxu0 %v1978_v8  ;;  %1930 = vmatpush3.bf16.msra.mxu1 %v1978_v8  ;;  %v739_v41 = vshrl.u32 %v1665_v21, 16  ;;  %v2637_v58 = vrot.slane %v1665_v21, 1  ;;  %v2677_v8 = vcombine.low %v2548_v6, %v2548_v6 }
  0x91   :  { %1120 = vrot.lane.b32.xlu1 %v2245_v22, %s1996_s4 }
  0x92   :  { %816 = vrot.lane.b32.xlu0 %v2420_v62, %s1990_s14  ;;  %v741_v62 = vshll.u32 %v1665_v21, 16 }
  0x94   :  { %v743_v61 = vrot.slane %v741_v62, 1 }
  0x95   :  { %1136 = vrot.lane.b32.xlu1 %v2285_v1, %s1996_s4  ;;  %v2568_v22 = vpop.permute.xlu1 %910  ;;  %v1666_v1 = vcombine.low %v2571_v33, %v591_v34  ;;  %v592_v34 = vld [vmem:[#allocation2 + $0x40] sm:$0xf] }
  0x96   :  { %832 = vrot.lane.b32.xlu0 %v2436_v16, %s1990_s14  ;;  %v2573_v35 = vpop.permute.xlu0 %908  ;;  %v2596_v51 = vor.u32 %v743_v61, %v739_v41  ;;  %v1682_v61 = vcombine.low %v592_v34, %v592_v34  ;;  %v2713_v52 = vcombine.low %v592_v34, %v593_v15 }
  0x97   :  { %v748_v43 = vshll.u32 %v1666_v1, 16  ;;  %v746_v47 = vshrl.u32 %v1666_v1, 16 }
  0x98   :  { %3185 = vst [vmem:[#allocation14_spill] sm:$0xff] %v2713_v52  ;;  %v949_v48 = vshll.u32 %v2713_v52, 16 }
  0x99   :  { %818 = vrot.lane.b32.xlu1 %v2523_v32, %s1990_s14  ;;  %v2580_v16 = vpop.permute.xlu1 %926  ;;  %v750_v56 = vrot.slane %v748_v43, 1 }
  0x9a   :  { %1122 = vrot.lane.b32.xlu0 %v2455_v57, %s1996_s4 }
  0x9b   :  { %v2615_v63 = vor.u32 %v750_v56, %v746_v47  ;;  %v613_v47 = vld [vmem:[#allocation2 + $0x94] sm:$0x1] }
  0x9c   :  { %v2584_v23 = vpop.permute.xlu0 %924  ;;  %v2722_v10 = vcombine.low %v612_v42, %v613_v47 }
  0x9d   :  { %834 = vrot.lane.b32.xlu1 %v2532_v2, %s1990_s14  ;;  %v2594_v46 = vpop.permute.xlu1 %858 }
  0x9e   :  { %1138 = vrot.lane.b32.xlu0 %v2472_v0, %s1996_s4  ;;  %3186 = vst [vmem:[#allocation15_spill] sm:$0xff] %v2722_v10  ;;  %v956_v42 = vshll.u32 %v2722_v10, 16 }
  0xa0   :  { %v2598_v37 = vpop.permute.xlu0 %860  ;;  %v958_v28 = vrot.slane %v956_v42, 1 }
  0xa1   :  { %1124 = vrot.lane.b32.xlu1 %v2589_v40, %s1996_s4  ;;  %v2607_v39 = vpop.permute.xlu1 %874 }
  0xa2   :  { %820 = vrot.lane.b32.xlu0 %v2596_v51, %s1990_s14 }
  0xa4   :  { %v2611_v60 = vpop.permute.xlu0 %876 }
  0xa5   :  { %1140 = vrot.lane.b32.xlu1 %v2603_v55, %s1996_s4  ;;  %v2619_v13 = vpop.permute.xlu1 %862 }
  0xa6   :  { %836 = vrot.lane.b32.xlu0 %v2609_v30, %s1990_s14 }
  0xa8   :  { %v2621_v49 = vpop.permute.xlu0 %810 }
  0xa9   :  { %822 = vrot.lane.b32.xlu1 %v2615_v63, %s1990_s14 }
  0xaa   :  { %864 = vrot.lane.b32.xlu0 %v2455_v57, %s1989_s9  ;;  %v2647_v57 = vrot.slane %v1673_v31, 1  ;;  %v2693_v31 = vcombine.low %v2562_v50, %v2562_v50  ;;  %v954_v50 = vshrl.u32 %v2722_v10, 16 }
  0xab   :  { %v2629_v53 = vpop.permute.xlu1 %878 }
  0xac   :  { %v2631_v17 = vpop.permute.xlu0 %812  ;;  %v2755_v11 = vor.u32 %v958_v28, %v954_v50 }
  0xad   :  { %838 = vrot.lane.b32.xlu1 %v2625_v3, %s1990_s14 }
  0xae   :  { %880 = vrot.lane.b32.xlu0 %v2472_v0, %s1989_s9  ;;  %v2655_v0 = vrot.slane %v1666_v1, 1 }
  0xaf   :  { %v2639_v5 = vpop.permute.xlu1 %826 }
  0xb0   :  { %v2641_v29 = vpop.permute.xlu0 %828 }
  0xb1   :  { %866 = vrot.lane.b32.xlu1 %v2589_v40, %s1989_s9 }
  0xb2   :  { %868 = vrot.lane.b32.xlu0 %v2637_v58, %s1989_s9 }
  0xb3   :  { %v2649_v38 = vpop.permute.xlu1 %814 }
  0xb4   :  { %v2651_v7 = vpop.permute.xlu0 %912 }
  0xb5   :  { %882 = vrot.lane.b32.xlu1 %v2603_v55, %s1989_s9 }
  0xb6   :  { %884 = vrot.lane.b32.xlu0 %v2647_v57, %s1989_s9 }
  0xb7   :  { %v2659_v59 = vpop.permute.xlu1 %830 }
  0xb8   :  { %v2661_v27 = vpop.permute.xlu0 %928 }
  0xb9   :  { %3181 = vst [vmem:[#allocation10_spill] sm:$0xff] %v2661_v27  ;;  %870 = vrot.lane.b32.xlu1 %v2655_v0, %s1989_s9 }
  0xba   :  { %916 = vrot.lane.b32.xlu0 %v2490_v19, %s1991_s19 }
  0xbb   :  { %v2669_v14 = vpop.permute.xlu1 %914 }
  0xbc   :  { %v2671_v21 = vpop.permute.xlu0 %960 }
  0xbd   :  { %886 = vrot.lane.b32.xlu1 %v2665_v36, %s1989_s9 }
  0xbe   :  { %932 = vrot.lane.b32.xlu0 %v2503_v24, %s1991_s19  ;;  %v2699_v24 = vcombine.low %v2582_v26, %v2582_v26  ;;  %v951_v26 = vrot.slane %v949_v48, 1 }
  0xbf   :  { %v2685_v62 = vpop.permute.xlu1 %930 }
  0xc0   :  { %3183 = vst [vmem:[#allocation12_spill] sm:$0xff] %v2685_v62  ;;  %v2687_v19 = vpop.permute.xlu0 %976 }
  0xc1   :  { %918 = vrot.lane.b32.xlu1 %v2677_v8, %s1991_s19 }
  0xc2   :  { %920 = vrot.lane.b32.xlu0 %v2683_v9, %s1991_s19 }
  0xc3   :  { %v2701_v41 = vpop.permute.xlu1 %962 }
  0xc4   :  { %v2703_v1 = vpop.permute.xlu0 %964 }
  0xc5   :  { %934 = vrot.lane.b32.xlu1 %v2693_v31, %s1991_s19 }
  0xc6   :  { %936 = vrot.lane.b32.xlu0 %v2699_v24, %s1991_s19 }
  0xc7   :  { %v2709_v43 = vpop.permute.xlu1 %978 }
  0xc8   :  { %v2711_v45 = vpop.permute.xlu0 %980 }
  0xc9   :  { %3184 = vst [vmem:[#allocation13_spill] sm:$0xff] %v2711_v45  ;;  %922 = vrot.lane.b32.xlu1 %v1682_v61, %s1991_s19 }
  0xca   :  { %968 = vrot.lane.b32.xlu0 %v2523_v32, %s1992_s28  ;;  %v947_v32 = vshrl.u32 %v2713_v52, 16 }
  0xcb   :  { %v2718_v56 = vpop.permute.xlu1 %966 }
  0xcc   :  { %v2720_v25 = vpop.permute.xlu0 %994 }
  0xcd   :  { %938 = vrot.lane.b32.xlu1 %v1690_v54, %s1991_s19 }
  0xce   :  { %984 = vrot.lane.b32.xlu0 %v2532_v2, %s1992_s28  ;;  %v2744_v2 = vor.u32 %v951_v26, %v947_v32 }
  0xcf   :  { %v2728_v34 = vpop.permute.xlu1 %982 }
  0xd0   :  { %3187 = vst [vmem:[#allocation16_spill] sm:$0xff] %v2728_v34  ;;  %v2730_v15 = vpop.permute.xlu0 %1010 }
  0xd1   :  { %970 = vrot.lane.b32.xlu1 %v2596_v51, %s1992_s28 }
  0xd2   :  { %972 = vrot.lane.b32.xlu0 %v2615_v63, %s1992_s28 }
  0xd3   :  { %v2738_v47 = vpop.permute.xlu1 %996 }
  0xd4   :  { %v2740_v33 = vpop.permute.xlu0 %998 }
  0xd5   :  { %986 = vrot.lane.b32.xlu1 %v2609_v30, %s1992_s28 }
  0xd6   :  { %988 = vrot.lane.b32.xlu0 %v2625_v3, %s1992_s28 }
  0xd7   :  { %v2749_v48 = vpop.permute.xlu1 %1012 }
  0xd8   :  { %v2751_v6 = vpop.permute.xlu0 %1014 }
  0xd9   :  { %3188 = vst [vmem:[#allocation17_spill] sm:$0xff] %v2751_v6  ;;  %974 = vrot.lane.b32.xlu1 %v2744_v2, %s1992_s28  ;;  %v3167_v6 = vrot.slane %v2722_v10, 1 }
  0xda   :  { %1002 = vrot.lane.b32.xlu0 %v2589_v40, %s1993_s0  ;;  %v3166_v40 = vrot.slane %v2713_v52, 1 }
  0xdb   :  { %v2759_v26 = vpop.permute.xlu1 %1000 }
  0xdc   :  { %v2761_v32 = vpop.permute.xlu0 %1032 }
  0xdd   :  { %990 = vrot.lane.b32.xlu1 %v2755_v11, %s1992_s28 }
  0xde   :  { %1018 = vrot.lane.b32.xlu0 %v2603_v55, %s1993_s0 }
  0xdf   :  { %v2767_v42 = vpop.permute.xlu1 %1016 }
  0xe0   :  { %3189 = vst [vmem:[#allocation18_spill] sm:$0xff] %v2767_v42  ;;  %v2769_v4 = vpop.permute.xlu0 %1048 }
  0xe1   :  { %1004 = vrot.lane.b32.xlu1 %v2637_v58, %s1993_s0 }
  0xe2   :  { %1006 = vrot.lane.b32.xlu0 %v2655_v0, %s1993_s0 }
  0xe3   :  { %v2775_v28 = vpop.permute.xlu1 %1034 }
  0xe4   :  { %v2777_v50 = vpop.permute.xlu0 %1036 }
  0xe5   :  { %3190 = vst [vmem:[#allocation19_spill] sm:$0xff] %v2777_v50  ;;  %1020 = vrot.lane.b32.xlu1 %v2647_v57, %s1993_s0 }
  0xe6   :  { %1022 = vrot.lane.b32.xlu0 %v2665_v36, %s1993_s0 }
  0xe7   :  { %v2784_v55 = vpop.permute.xlu1 %1050 }
  0xe8   :  { %v2786_v42 = vpop.permute.xlu0 %1052 }
  0xe9   :  { %3191 = vst [vmem:[#allocation20_spill] sm:$0xff] %v2786_v42  ;;  %1008 = vrot.lane.b32.xlu1 %v3166_v40, %s1993_s0  ;;  %v595_v40 = vld [vmem:[#allocation2 + $0x4c] sm:$0x1] }
  0xea   :  { %1040 = vrot.lane.b32.xlu0 %v2677_v8, %s1994_s29  ;;  %v594_v8 = vld [vmem:[#allocation2 + $0x48] sm:$0xf] }
  0xeb   :  { %v2794_v34 = vpop.permute.xlu1 %1038  ;;  %v2814_v10 = vcombine.low %v594_v8, %v595_v40  ;;  %v615_v40 = vld [vmem:[#allocation2 + $0x9c] sm:$0x1] }
  0xec   :  { %3192 = vst [vmem:[#allocation21_spill] sm:$0xff] %v2794_v34  ;;  %v2796_v45 = vpop.permute.xlu0 %1084 }
  0xed   :  { %1024 = vrot.lane.b32.xlu1 %v3167_v6, %s1993_s0  ;;  %v1693_v6 = vcombine.low %v594_v8, %v594_v8 }
  0xee   :  { %1056 = vrot.lane.b32.xlu0 %v2693_v31, %s1994_s29  ;;  %v614_v31 = vld [vmem:[#allocation2 + $0x98] sm:$0xf] }
  0xef   :  { %v2803_v42 = vpop.permute.xlu1 %1054  ;;  %v2835_v50 = vcombine.low %v614_v31, %v615_v40 }
  0xf0   :  { %3193 = vst [vmem:[#allocation22_spill] sm:$0xff] %v2803_v42  ;;  %v2805_v36 = vpop.permute.xlu0 %1100 }
  0xf1   :  { %1042 = vrot.lane.b32.xlu1 %v2683_v9, %s1994_s29 }
  0xf2   :  { %1044 = vrot.lane.b32.xlu0 %v1682_v61, %s1994_s29  ;;  %v1979_v61 = vld [vmem:[#allocation2 + $0x8] sm:$0xf] }
  0xf3   :  { %v1087_v62 = vpop.permute.xlu1 %1086  ;;  %v1156_v52 = vsel %vm1150_vm7, %v1979_v61, %v2621_v49  ;;  %v1981_v61 = vld [vmem:[#allocation2 + $0x58] sm:$0xf] }
  0xf4   :  { %v2810_v27 = vpop.permute.xlu0 %1088  ;;  %v1203_v49 = vsel %vm1199_vm8, %v1156_v52, %v2594_v46  ;;  %v1982_v46 = vld [vmem:[#allocation2 + $0x50] sm:$0xf] }
  0xf5   :  { %3194 = vst [vmem:[#allocation23_spill] sm:$0xff] %v2810_v27  ;;  %1058 = vrot.lane.b32.xlu1 %v2699_v24, %s1994_s29  ;;  %v1694_v27 = vcombine.low %v614_v31, %v614_v31  ;;  %v1073_v24 = vshll.u32 %v2814_v10, 16 }
  0xf6   :  { %1060 = vrot.lane.b32.xlu0 %v1690_v54, %s1994_s29  ;;  %v1980_v54 = vld [vmem:[#allocation2] sm:$0xf] }
  0xf7   :  { %v2817_v42 = vpop.permute.xlu1 %1102  ;;  %v1153_v8 = vsel %vm1150_vm7, %v1980_v54, %v2554_v18  ;;  %v1075_v18 = vrot.slane %v1073_v24, 1 }
  0xf8   :  { %v2819_v9 = vpop.permute.xlu0 %1104  ;;  %v1201_v54 = vsel %vm1199_vm8, %v1153_v8, %v2525_v20 }
  0xf9   :  { %3195 = vst [vmem:[#allocation24_spill] sm:$0xff] %v2819_v9  ;;  %1046 = vrot.lane.b32.xlu1 %v1693_v6, %s1994_s29  ;;  %v1180_v9 = vsel %vm1150_vm7, %v1981_v61, %v2639_v5  ;;  %v1177_v5 = vsel %vm1150_vm7, %v1982_v46, %v2550_v44  ;;  %v1234_v52 = vsel %vm1232_vm9, %v1201_v54, %v2573_v35 }
  0xfa   :  { %1092 = vrot.lane.b32.xlu0 %v2596_v51, %s1995_s30  ;;  %v1071_v51 = vshrl.u32 %v2814_v10, 16  ;;  %v1219_v20 = vsel %vm1199_vm8, %v1180_v9, %v2607_v39  ;;  %v1267_v24 = vsel %vm1265_vm10, %v1234_v52, %v2671_v21  ;;  %v1080_v39 = vshll.u32 %v2835_v50, 16 }
  0xfb   :  { %v2829_v34 = vpop.permute.xlu1 %1090  ;;  %v1300_v44 = vsel %vm1298_vm11, %v1267_v24, %v2720_v25  ;;  %v1217_v21 = vsel %vm1199_vm8, %v1177_v5, %v2539_v12  ;;  %v1078_v25 = vshrl.u32 %v2835_v50, 16  ;;  %v1986_v24 = vld [vmem:[#allocation2 + $0x68] sm:$0xf] }
  0xfc   :  { %v1119_v6 = vpop.permute.xlu0 %1118  ;;  %v1076_v35 = vor.u32 %v1075_v18, %v1071_v51 }
  0xfd   :  { %1062 = vrot.lane.b32.xlu1 %v1694_v27, %s1994_s29  ;;  %v1236_v27 = vsel %vm1232_vm9, %v1203_v49, %v2568_v22 }
  0xfe   :  { %1108 = vrot.lane.b32.xlu0 %v2609_v30, %s1995_s30  ;;  %v1269_v30 = vsel %vm1265_vm10, %v1236_v27, %v2701_v41  ;;  %v1333_v41 = vsel %vm1331_vm12, %v1300_v44, %v2761_v32 }
  0xff   :  { %v2849_v31 = vpop.permute.xlu1 %1106  ;;  %v1302_v22 = vsel %vm1298_vm11, %v1269_v30, %v2738_v47  ;;  %v1252_v47 = vsel %vm1232_vm9, %v1219_v20, %v2580_v16  ;;  %v1366_v12 = vsel %vm1364_vm13, %v1333_v41, %v2796_v45  ;;  %v1186_v30 = vsel %vm1150_vm7, %v1986_v24, %v2659_v59  ;;  %v3213_v24 = vld [vmem:[#allocation3_spill] sm:$0xff] }
 0x100   :  { %v1135_v40 = vpop.permute.xlu0 %1134  ;;  %v1335_v9 = vsel %vm1331_vm12, %v1302_v22, %v2775_v28  ;;  %v1399_v49 = vsel %vm1397_vm14, %v1366_v12, %v1119_v6  ;;  %v3204_v12 = vld [vmem:[#allocation16_spill] sm:$0xff] }
 0x101   :  { %1094 = vrot.lane.b32.xlu1 %v2615_v63, %s1995_s30  ;;  %v1250_v63 = vsel %vm1232_vm9, %v1217_v21, %v2584_v23  ;;  %v1368_v8 = vsel %vm1364_vm13, %v1335_v9, %v1087_v62 }
 0x102   :  { %1096 = vrot.lane.b32.xlu0 %v2744_v2, %s1995_s30  ;;  %v1283_v28 = vsel %vm1265_vm10, %v1250_v63, %v2687_v19  ;;  %v1285_v2 = vsel %vm1265_vm10, %v1252_v47, %v2709_v43  ;;  %v1082_v19 = vrot.slane %v1080_v39, 1  ;;  %v3203_v63 = vld [vmem:[#allocation13_spill] sm:$0xff] }
 0x103   :  { %v1121_v32 = vpop.permute.xlu1 %1120  ;;  %v1316_v16 = vsel %vm1298_vm11, %v1283_v28, %v2730_v15  ;;  %v1318_v45 = vsel %vm1298_vm11, %v1285_v2, %v2749_v48 }
 0x104   :  { %v1401_v61 = vsel %vm1397_vm14, %v1368_v8, %v1121_v32  ;;  %v2886_v23 = vpop.permute.xlu0 %816  ;;  %v1349_v43 = vsel %vm1331_vm12, %v1316_v16, %v2769_v4  ;;  %v1351_v6 = vsel %vm1331_vm12, %v1318_v45, %v2784_v55  ;;  %v1083_v54 = vor.u32 %v1082_v19, %v1078_v25  ;;  %v3206_v16 = vld [vmem:[#allocation18_spill] sm:$0xff] }
 0x105   :  { %1110 = vrot.lane.b32.xlu1 %v2625_v3, %s1995_s30  ;;  %v1698_v62 = vcombine.low %v1399_v49, %v1401_v61  ;;  %v1382_v15 = vsel %vm1364_vm13, %v1349_v43, %v2805_v36  ;;  %v1384_v48 = vsel %vm1364_vm13, %v1351_v6, %v2817_v42  ;;  %v1984_v42 = vld [vmem:[#allocation2 + $0x18] sm:$0xf]  ;;  %v3205_v49 = vld [vmem:[#allocation17_spill] sm:$0xff]  ;;  %v1116_v19 = vrot.slane %v2814_v10, 1  ;;  %v3208_v43 = vld [vmem:[#allocation20_spill] sm:$0xff] }
 0x106   :  { %1112 = vrot.lane.b32.xlu0 %v2755_v11, %s1995_s30  ;;  %v1415_v3 = vsel %vm1397_vm14, %v1382_v15, %v1135_v40  ;;  %v1983_v11 = vld [vmem:[#allocation2 + $0x10] sm:$0xf]  ;;  %v1162_v46 = vsel %vm1150_vm7, %v1984_v42, %v2649_v38  ;;  %v3209_v15 = vld [vmem:[#allocation22_spill] sm:$0xff] }
 0x107   :  { %v1137_v51 = vpop.permute.xlu1 %1136  ;;  %1909 = vmatprep.mubr.msk.bf16.mxu0 %vm1497_vm15, %v1698_v62  ;;  %v1159_v36 = vsel %vm1150_vm7, %v1983_v11, %v2631_v17  ;;  %v1985_v17 = vld [vmem:[#allocation2 + $0x60] sm:$0xf] }
 0x108   :  { %v1417_v18 = vsel %vm1397_vm14, %v1384_v48, %v1137_v51  ;;  %v2907_v4 = vpop.permute.xlu0 %832  ;;  %v1205_v27 = vsel %vm1199_vm8, %v1159_v36, %v2598_v37  ;;  %v1183_v38 = vsel %vm1150_vm7, %v1985_v17, %v2641_v29  ;;  %v3210_v51 = vld [vmem:[#allocation15_spill] sm:$0xff] }
 0x109   :  { %1098 = vrot.lane.b32.xlu1 %v1076_v35, %s1995_s30  ;;  %v1702_v55 = vcombine.low %v1415_v3, %v1417_v18  ;;  %v1238_v20 = vsel %vm1232_vm9, %v1205_v27, %v2651_v7  ;;  %v1221_v59 = vsel %vm1199_vm8, %v1183_v38, %v2611_v60  ;;  %v3202_v60 = vld [vmem:[#allocation23_spill] sm:$0xff]  ;;  %v3211_v3 = vrot.slane %v3210_v51, 1  ;;  %v3212_v18 = vld [vmem:[#allocation24_spill] sm:$0xff] }
 0x10a   :  { %1126 = vrot.lane.b32.xlu0 %v2637_v58, %s1996_s4  ;;  %v1207_v58 = vsel %vm1199_vm8, %v1162_v46, %v2619_v13  ;;  %v1271_v13 = vsel %vm1265_vm10, %v1238_v20, %v2703_v1  ;;  %v3196_v1 = vld [vmem:[#allocation19_spill] sm:$0xff] }
 0x10b   :  { %v2916_v5 = vpop.permute.xlu1 %818  ;;  %1917 = vmatprep.mubr.msk.bf16.mxu1 %vm1497_vm15, %v1702_v55  ;;  %v1240_v37 = vsel %vm1232_vm9, %v1207_v58, %v2669_v14  ;;  %v1304_v29 = vsel %vm1298_vm11, %v1271_v13, %v2740_v33  ;;  %v1223_v14 = vsel %vm1199_vm8, %v1186_v30, %v2629_v53  ;;  %v3198_v33 = vld [vmem:[#allocation14_spill] sm:$0xff]  ;;  %v1987_v58 = vld [vmem:[#allocation2 + $0x20] sm:$0xf]  ;;  %v1189_v30 = vsel %vm1150_vm7, %v3213_v24, %v2907_v4  ;;  %v3214_v13 = vld [vmem:[#allocation4_spill] sm:$0xff] }
 0x10c   :  { %v1123_v52 = vpop.permute.xlu0 %1122  ;;  %v1337_v22 = vsel %vm1331_vm12, %v1304_v29, %v3196_v1  ;;  %v3199_v39 = vrot.slane %v3198_v33, 1  ;;  %v3215_v29 = vld [vmem:[#allocation6_spill] sm:$0xff]  ;;  %v3216_v1 = vld [vmem:[#allocation5_spill] sm:$0xff] }
 0x10d   :  { %1114 = vrot.lane.b32.xlu1 %v1083_v54, %s1995_s30  ;;  %v1370_v9 = vsel %vm1364_vm13, %v1337_v22, %v3202_v60 }
 0x10e   :  { %1142 = vrot.lane.b32.xlu0 %v2647_v57, %s1996_s4  ;;  %v1273_v57 = vsel %vm1265_vm10, %v1240_v37, %v2718_v56  ;;  %v3197_v56 = vld [vmem:[#allocation21_spill] sm:$0xff]  ;;  %v1403_v32 = vsel %vm1397_vm14, %v1370_v9, %v1123_v52  ;;  %v1117_v52 = vrot.slane %v2835_v50, 1 }
 0x10f   :  { %v835_v40 = vpop.permute.xlu1 %834  ;;  %v1306_v7 = vsel %vm1298_vm11, %v1273_v57, %v2759_v26  ;;  %v3200_v26 = vld [vmem:[#allocation10_spill] sm:$0xff]  ;;  %v1168_v57 = vsel %vm1150_vm7, %v3214_v13, %v2916_v5 }
 0x110   :  { %v1139_v44 = vpop.permute.xlu0 %1138  ;;  %v1339_v35 = vsel %vm1331_vm12, %v1306_v7, %v3197_v56  ;;  %v1254_v21 = vsel %vm1232_vm9, %v1221_v59, %v3200_v26  ;;  %v1192_v22 = vsel %vm1150_vm7, %v3216_v1, %v835_v40  ;;  %v3217_v56 = vld [vmem:[#allocation7_spill] sm:$0xff]  ;;  %v3218_v26 = vld [vmem:[#allocation8_spill] sm:$0xff] }
 0x111   :  { %1128 = vrot.lane.b32.xlu1 %v2655_v0, %s1996_s4  ;;  %v3201_v0 = vld [vmem:[#allocation12_spill] sm:$0xff]  ;;  %v1372_v53 = vsel %vm1364_vm13, %v1339_v35, %v2829_v34  ;;  %v1287_v47 = vsel %vm1265_vm10, %v1254_v21, %v3203_v63  ;;  %v3207_v34 = vld [vmem:[#allocation11_spill] sm:$0xff] }
 0x112   :  { %1130 = vrot.lane.b32.xlu0 %v3199_v39, %s1996_s4  ;;  %v1256_v41 = vsel %vm1232_vm9, %v1223_v14, %v3201_v0  ;;  %v1320_v61 = vsel %vm1298_vm11, %v1287_v47, %v3205_v49 }
 0x113   :  { %v1125_v25 = vpop.permute.xlu1 %1124  ;;  %v1289_v8 = vsel %vm1265_vm10, %v1256_v41, %v3204_v12  ;;  %v1353_v6 = vsel %vm1331_vm12, %v1320_v61, %v3208_v43 }
 0x114   :  { %v1405_v28 = vsel %vm1397_vm14, %v1372_v53, %v1125_v25  ;;  %v821_v2 = vpop.permute.xlu0 %820  ;;  %v1322_v45 = vsel %vm1298_vm11, %v1289_v8, %v3206_v16  ;;  %v1386_v55 = vsel %vm1364_vm13, %v1353_v6, %v3212_v18  ;;  %v3219_v53 = vld [vmem:[#allocation9_spill] sm:$0xff] }
 0x115   :  { %v1699_v62 = vcombine.low %v1403_v32, %v1405_v28  ;;  %1144 = vrot.lane.b32.xlu1 %v3207_v34, %s1996_s4  ;;  %v1355_v48 = vsel %vm1331_vm12, %v1322_v45, %v3209_v15  ;;  %v1419_v10 = vsel %vm1397_vm14, %v1386_v55, %v1139_v44 }
 0x116   :  { %1146 = vrot.lane.b32.xlu0 %v3211_v3, %s1996_s4  ;;  %v1388_v54 = vsel %vm1364_vm13, %v1355_v48, %v2849_v31  ;;  %v1165_v31 = vsel %vm1150_vm7, %v1987_v58, %v2886_v23  ;;  %v1171_v23 = vsel %vm1150_vm7, %v3215_v29, %v821_v2 }
 0x117   :  { %v1141_v11 = vpop.permute.xlu1 %1140  ;;  %1910 = vmatmul.mubr.msk.bf16.vlgmr.msra.gmra.mxu0 %vm1497_vm15, %v1699_v62 }
 0x118   :  { %v1421_v36 = vsel %vm1397_vm14, %v1388_v54, %v1141_v11  ;;  %v837_v42 = vpop.permute.xlu0 %836 }
 0x119   :  { %v1703_v46 = vcombine.low %v1419_v10, %v1421_v36  ;;  %1132 = vrot.lane.b32.xlu1 %v1116_v19, %s1996_s4  ;;  %v1195_v35 = vsel %vm1150_vm7, %v3217_v56, %v837_v42 }
 0x11b   :  { %v823_v27 = vpop.permute.xlu1 %822  ;;  %1918 = vmatmul.mubr.msk.bf16.vlgmr.msra.gmra.mxu1 %vm1497_vm15, %v1703_v46 }
 0x11c   :  { %v865_v17 = vpop.permute.xlu0 %864  ;;  %v1174_v21 = vsel %vm1150_vm7, %v3218_v26, %v823_v27 }
 0x11d   :  { %v1209_v38 = vsel %vm1199_vm8, %v1165_v31, %v865_v17  ;;  %1148 = vrot.lane.b32.xlu1 %v1117_v52, %s1996_s4 }
 0x11f   :  { %v839_v20 = vpop.permute.xlu1 %838 }
 0x120   :  { %v881_v37 = vpop.permute.xlu0 %880  ;;  %v1198_v40 = vsel %vm1150_vm7, %v3219_v53, %v839_v20 }
 0x121   :  { %v1225_v50 = vsel %vm1199_vm8, %v1189_v30, %v881_v37 }
 0x123   :  { %v867_v44 = vpop.permute.xlu1 %866 }
 0x124   :  { %v1211_v7 = vsel %vm1199_vm8, %v1168_v57, %v867_v44  ;;  %v869_v59 = vpop.permute.xlu0 %868 }
 0x125   :  { %v1213_v14 = vsel %vm1199_vm8, %v1171_v23, %v869_v59 }
 0x127   :  { %v883_v4 = vpop.permute.xlu1 %882 }
 0x128   :  { %v1227_v33 = vsel %vm1199_vm8, %v1192_v22, %v883_v4  ;;  %v885_v39 = vpop.permute.xlu0 %884 }
 0x129   :  { %v1229_v5 = vsel %vm1199_vm8, %v1195_v35, %v885_v39 }
 0x12b   :  { %v871_v0 = vpop.permute.xlu1 %870 }
 0x12c   :  { %v1215_v41 = vsel %vm1199_vm8, %v1174_v21, %v871_v0  ;;  %v917_v60 = vpop.permute.xlu0 %916 }
 0x12d   :  { %v1242_v9 = vsel %vm1232_vm9, %v1209_v38, %v917_v60 }
 0x12f   :  { %v887_v25 = vpop.permute.xlu1 %886 }
 0x130   :  { %v1231_v63 = vsel %vm1199_vm8, %v1198_v40, %v887_v25  ;;  %v933_v47 = vpop.permute.xlu0 %932 }
 0x131   :  { %v1258_v12 = vsel %vm1232_vm9, %v1225_v50, %v933_v47 }
 0x133   :  { %v919_v8 = vpop.permute.xlu1 %918 }
 0x134   :  { %v1244_v32 = vsel %vm1232_vm9, %v1211_v7, %v919_v8  ;;  %v921_v28 = vpop.permute.xlu0 %920 }
 0x135   :  { %v3024_v2 = vsel %vm1232_vm9, %v1213_v14, %v921_v28 }
 0x137   :  { %v935_v49 = vpop.permute.xlu1 %934 }
 0x138   :  { %v1260_v61 = vsel %vm1232_vm9, %v1227_v33, %v935_v49  ;;  %v937_v16 = vpop.permute.xlu0 %936 }
 0x139   :  { %v3028_v45 = vsel %vm1232_vm9, %v1229_v5, %v937_v16 }
 0x13b   :  { %v923_v62 = vpop.permute.xlu1 %922 }
 0x13c   :  { %v1248_v34 = vsel %vm1232_vm9, %v1215_v41, %v923_v62  ;;  %v969_v19 = vpop.permute.xlu0 %968 }
 0x13d   :  { %v1275_v22 = vsel %vm1265_vm10, %v1242_v9, %v969_v19 }
 0x13f   :  { %v939_v43 = vpop.permute.xlu1 %938 }
 0x140   :  { %v3032_v6 = vsel %vm1232_vm9, %v1231_v63, %v939_v43  ;;  %v985_v15 = vpop.permute.xlu0 %984 }
 0x141   :  { %v1291_v41 = vsel %vm1265_vm10, %v1258_v12, %v985_v15 }
 0x143   :  { %v971_v48 = vpop.permute.xlu1 %970 }
 0x144   :  { %v973_v51 = vpop.permute.xlu0 %972  ;;  %v1277_v4 = vsel %vm1265_vm10, %v1244_v32, %v971_v48 }
 0x147   :  { %v987_v3 = vpop.permute.xlu1 %986 }
 0x148   :  { %v3034_v18 = vpop.permute.xlu0 %988  ;;  %v1293_v60 = vsel %vm1265_vm10, %v1260_v61, %v987_v3  ;;  %v1279_v61 = vsel %vm1265_vm10, %v3024_v2, %v973_v51 }
 0x14b   :  { %v975_v55 = vpop.permute.xlu1 %974 }
 0x14c   :  { %v1003_v54 = vpop.permute.xlu0 %1002  ;;  %v1281_v16 = vsel %vm1265_vm10, %v1248_v34, %v975_v55  ;;  %v1295_v34 = vsel %vm1265_vm10, %v3028_v45, %v3034_v18 }
 0x14d   :  { %v1308_v56 = vsel %vm1298_vm11, %v1275_v22, %v1003_v54 }
 0x14f   :  { %v3036_v11 = vpop.permute.xlu1 %990 }
 0x150   :  { %v1019_v10 = vpop.permute.xlu0 %1018  ;;  %v1297_v51 = vsel %vm1265_vm10, %v3032_v6, %v3036_v11 }
 0x151   :  { %v1324_v40 = vsel %vm1298_vm11, %v1291_v41, %v1019_v10 }
 0x153   :  { %v1005_v36 = vpop.permute.xlu1 %1004 }
 0x154   :  { %v1007_v42 = vpop.permute.xlu0 %1006  ;;  %v1310_v35 = vsel %vm1298_vm11, %v1277_v4, %v1005_v36 }
 0x155   :  { %v1312_v43 = vsel %vm1298_vm11, %v1279_v61, %v1007_v42 }
 0x157   :  { %v1021_v46 = vpop.permute.xlu1 %1020 }
 0x158   :  { %v1023_v52 = vpop.permute.xlu0 %1022  ;;  %v1326_v25 = vsel %vm1298_vm11, %v1293_v60, %v1021_v46 }
 0x159   :  { %v1328_v46 = vsel %vm1298_vm11, %v1295_v34, %v1023_v52 }
 0x15b   :  { %v1009_v27 = vpop.permute.xlu1 %1008 }
 0x15c   :  { %v1041_v58 = vpop.permute.xlu0 %1040  ;;  %v1314_v15 = vsel %vm1298_vm11, %v1281_v16, %v1009_v27 }
 0x15d   :  { %v1341_v39 = vsel %vm1331_vm12, %v1308_v56, %v1041_v58 }
 0x15f   :  { %v1025_v31 = vpop.permute.xlu1 %1024 }
 0x160   :  { %v1057_v17 = vpop.permute.xlu0 %1056  ;;  %v1330_v27 = vsel %vm1298_vm11, %v1297_v51, %v1025_v31  ;;  %v1697_v31 = vld [vmem:[%s3156_s2] ss:$0 sm:$0xff] }
 0x161   :  { %v1357_v47 = vsel %vm1331_vm12, %v1324_v40, %v1057_v17 }
 0x163   :  { %v1043_v38 = vpop.permute.xlu1 %1042 }
 0x164   :  { %v1045_v20 = vpop.permute.xlu0 %1044  ;;  %v1343_v5 = vsel %vm1331_vm12, %v1310_v35, %v1043_v38 }
 0x165   :  { %v1345_v3 = vsel %vm1331_vm12, %v1312_v43, %v1045_v20 }
 0x167   :  { %v1059_v24 = vpop.permute.xlu1 %1058 }
 0x168   :  { %v1061_v30 = vpop.permute.xlu0 %1060  ;;  %v1359_v8 = vsel %vm1331_vm12, %v1326_v25, %v1059_v24 }
 0x169   :  { %v1361_v38 = vsel %vm1331_vm12, %v1328_v46, %v1061_v30 }
 0x16b   :  { %v1047_v37 = vpop.permute.xlu1 %1046 }
 0x16c   :  { %v1093_v50 = vpop.permute.xlu0 %1092  ;;  %v1347_v54 = vsel %vm1331_vm12, %v1314_v15, %v1047_v37 }
 0x16d   :  { %v1374_v26 = vsel %vm1364_vm13, %v1341_v39, %v1093_v50 }
 0x16f   :  { %v1063_v13 = vpop.permute.xlu1 %1062 }
 0x170   :  { %v1109_v57 = vpop.permute.xlu0 %1108  ;;  %v1363_v20 = vsel %vm1331_vm12, %v1330_v27, %v1063_v13 }
 0x171   :  { %v1390_v32 = vsel %vm1364_vm13, %v1357_v47, %v1109_v57 }
 0x173   :  { %v1095_v44 = vpop.permute.xlu1 %1094 }
 0x174   :  { %v1097_v29 = vpop.permute.xlu0 %1096  ;;  %v1376_v21 = vsel %vm1364_vm13, %v1343_v5, %v1095_v44 }
 0x175   :  { %v1378_v10 = vsel %vm1364_vm13, %v1345_v3, %v1097_v29 }
 0x177   :  { %v1111_v23 = vpop.permute.xlu1 %1110 }
 0x178   :  { %v1113_v7 = vpop.permute.xlu0 %1112  ;;  %v1392_v28 = vsel %vm1364_vm13, %v1359_v8, %v1111_v23 }
 0x179   :  { %v1394_v45 = vsel %vm1364_vm13, %v1361_v38, %v1113_v7 }
 0x17b   :  { %v1099_v59 = vpop.permute.xlu1 %1098 }
 0x17c   :  { %v1127_v14 = vpop.permute.xlu0 %1126  ;;  %v1380_v36 = vsel %vm1364_vm13, %v1347_v54, %v1099_v59 }
 0x17d   :  { %v1407_v9 = vsel %vm1397_vm14, %v1374_v26, %v1127_v14 }
 0x17f   :  { %v1115_v1 = vpop.permute.xlu1 %1114 }
 0x180   :  { %v1143_v33 = vpop.permute.xlu0 %1142  ;;  %v1396_v18 = vsel %vm1364_vm13, %v1363_v20, %v1115_v1 }
 0x181   :  { %v1423_v62 = vsel %vm1397_vm14, %v1390_v32, %v1143_v33 }
 0x183   :  { %v1129_v0 = vpop.permute.xlu1 %1128 }
 0x184   :  { %v1409_v53 = vsel %vm1397_vm14, %v1376_v21, %v1129_v0  ;;  %v1131_v12 = vpop.permute.xlu0 %1130 }
 0x185   :  { %v1700_v63 = vcombine.low %v1407_v9, %v1409_v53  ;;  %v1411_v55 = vsel %vm1397_vm14, %v1378_v10, %v1131_v12 }
 0x187   :  { %v1145_v49 = vpop.permute.xlu1 %1144  ;;  %1913 = vmatprep.mubr.msk.bf16.mxu0 %vm1497_vm15, %v1700_v63 }
 0x188   :  { %v1425_v19 = vsel %vm1397_vm14, %v1392_v28, %v1145_v49  ;;  %v1147_v58 = vpop.permute.xlu0 %1146 }
 0x189   :  { %v1704_v48 = vcombine.low %v1423_v62, %v1425_v19  ;;  %v1427_v6 = vsel %vm1397_vm14, %v1394_v45, %v1147_v58 }
 0x18b   :  { %v1133_v2 = vpop.permute.xlu1 %1132  ;;  %1921 = vmatprep.mubr.msk.bf16.mxu1 %vm1497_vm15, %v1704_v48 }
 0x18c   :  { %v1413_v42 = vsel %vm1397_vm14, %v1380_v36, %v1133_v2 }
 0x18d   :  { %v1701_v17 = vcombine.low %v1411_v55, %v1413_v42 }
 0x18f   :  { %v1149_v24 = vpop.permute.xlu1 %1148  ;;  %1914 = vmatmul.mubr.msk.bf16.gmra.mxu0 %vm1497_vm15, %v1701_v17 }
 0x190   :  { %v1429_v11 = vsel %vm1397_vm14, %v1396_v18, %v1149_v24 }
 0x191   :  { %v1705_v52 = vcombine.low %v1427_v6, %v1429_v11 }
 0x193   :  { %1922 = vmatmul.mubr.msk.bf16.gmra.mxu1 %vm1497_vm15, %v1705_v52 }
 0x1d7   :  { %v1911_v30 = vpop.f32.mrf.mxu0 }
 0x1d8   :  { %v1569_v37 = vadd.f32 %v1911_v30, %v1697_v31 }
 0x1d9   :  { %v1560_v50 = vpop.f32.mrf.mxu0 }
 0x1da   :  { %1625 = vst.msk [vmem:[%s3157_s3 + $0x10] sm:$0xff] %vm1199_vm8, %v1569_v37  ;;  %v1561_v13 = vadd.f32 %v1697_v31, %v1560_v50 }
 0x1db   :  { %v1912_v57 = vpop.f32.mrf.mxu0  ;;  %v1919_v44 = vpop.f32.mrf.mxu1 }
 0x1dc   :  { %1623 = vst.msk [vmem:[%s3157_s3] sm:$0xff] %vm1199_vm8, %v1561_v13  ;;  %v1572_v29 = vadd.f32 %v1912_v57, %v1697_v31  ;;  %v1601_v23 = vadd.f32 %v1919_v44, %v1697_v31 }
 0x1dd   :  { %v1563_v7 = vpop.f32.mrf.mxu0  ;;  %v1592_v59 = vpop.f32.mrf.mxu1 }
 0x1de   :  { %1626 = vst.msk [vmem:[%s3157_s3 + $0x18] sm:$0xff] %vm1199_vm8, %v1572_v29  ;;  %1633 = vst.msk [vmem:[%s3157_s3 + $0x50] sm:$0xff] %vm1199_vm8, %v1601_v23  ;;  %v1564_v14 = vadd.f32 %v1697_v31, %v1563_v7  ;;  %v1593_v1 = vadd.f32 %v1697_v31, %v1592_v59 }
 0x1df   :  { %v1920_v22 = vpop.f32.mrf.mxu1 }
 0x1e0   :  { %1624 = vst.msk [vmem:[%s3157_s3 + $0x8] sm:$0xff] %vm1199_vm8, %v1564_v14  ;;  %1631 = vst.msk [vmem:[%s3157_s3 + $0x40] sm:$0xff] %vm1199_vm8, %v1593_v1  ;;  %v1604_v4 = vadd.f32 %v1920_v22, %v1697_v31 }
 0x1e1   :  { %v1595_v56 = vpop.f32.mrf.mxu1 }
 0x1e2   :  { %1634 = vst.msk [vmem:[%s3157_s3 + $0x58] sm:$0xff] %vm1199_vm8, %v1604_v4  ;;  %v1596_v35 = vadd.f32 %v1697_v31, %v1595_v56 }
 0x1e4   :  { %1632 = vst.msk [vmem:[%s3157_s3 + $0x48] sm:$0xff] %vm1199_vm8, %v1596_v35 }
 0x24f   :  { %v1915_v33 = vpop.f32.mrf.mxu0 }
 0x250   :  { %v1585_v39 = vadd.f32 %v1915_v33, %v1697_v31 }
 0x251   :  { %v1576_v5 = vpop.f32.mrf.mxu0 }
 0x252   :  { %1629 = vst.msk [vmem:[%s3157_s3 + $0x30] sm:$0xff] %vm1199_vm8, %v1585_v39  ;;  %v1577_v26 = vadd.f32 %v1697_v31, %v1576_v5 }
 0x253   :  { %v1916_v21 = vpop.f32.mrf.mxu0  ;;  %v1923_v0 = vpop.f32.mrf.mxu1 }
 0x254   :  { %1627 = vst.msk [vmem:[%s3157_s3 + $0x20] sm:$0xff] %vm1199_vm8, %v1577_v26  ;;  %v1588_v41 = vadd.f32 %v1916_v21, %v1697_v31  ;;  %v1617_v60 = vadd.f32 %v1923_v0, %v1697_v31 }
 0x255   :  { %v1579_v9 = vpop.f32.mrf.mxu0  ;;  %v1608_v53 = vpop.f32.mrf.mxu1 }
 0x256   :  { %1630 = vst.msk [vmem:[%s3157_s3 + $0x38] sm:$0xff] %vm1199_vm8, %v1588_v41  ;;  %1637 = vst.msk [vmem:[%s3157_s3 + $0x70] sm:$0xff] %vm1199_vm8, %v1617_v60  ;;  %v1580_v40 = vadd.f32 %v1697_v31, %v1579_v9  ;;  %v1609_v25 = vadd.f32 %v1697_v31, %v1608_v53 }
 0x257   :  { %v1924_v63 = vpop.f32.mrf.mxu1 }
 0x258   :  { %1628 = vst.msk [vmem:[%s3157_s3 + $0x28] sm:$0xff] %vm1199_vm8, %v1580_v40  ;;  %1635 = vst.msk [vmem:[%s3157_s3 + $0x60] sm:$0xff] %vm1199_vm8, %v1609_v25  ;;  %v1620_v47 = vadd.f32 %v1924_v63, %v1697_v31 }
 0x259   :  { %v1611_v8 = vpop.f32.mrf.mxu1 }
 0x25a   :  { %1638 = vst.msk [vmem:[%s3157_s3 + $0x78] sm:$0xff] %vm1199_vm8, %v1620_v47  ;;  %v1612_v32 = vadd.f32 %v1697_v31, %v1611_v8 }
 0x25c   :  { %1636 = vst.msk [vmem:[%s3157_s3 + $0x68] sm:$0xff] %vm1199_vm8, %v1612_v32 }

</bundles_post_ra>
